<compile_context>
chip_gen: v5e
topology: v5e:2x2
jax: 0.10.0
libtpu: 0.0.40
codegen_flags: <defaults>
</compile_context>

<pallas_src>
import functools

import jax
import jax.numpy as jnp
import numpy as np
from jax.experimental import pallas as pl
from jax.experimental.pallas import tpu as pltpu


LANE = 128        # vreg lane width
SUBLANE = 8       # vreg sublane count
MAX_TIME_CHUNK = 128


def _round_up(x, m):
    return ((x + m - 1) // m) * m


def _pad_to(x, target_shape):
    pads = tuple((0, t - s) for s, t in zip(x.shape, target_shape))
    if all(p == (0, 0) for p in pads):
        return x
    return jnp.pad(x, pads)


# ----------------------------- Pallas kernel ------------------------------ #

def tfgridnet_stream_kernel(
    mix_ref,     # [Tc, Bb, F]   input TF frames (time chunk, time-major)
    embp_ref,    # [Bb, Hp]      precomputed emb @ w_emb + b1   (f32)
    h1_ref,      # [Bb, Hp]      initial state "inter_rnn_h1"   (f32)
    h2_ref,      # [Bb, Hp]      initial state "inter_rnn_h2"   (f32)
    w_in_ref,    # [F, Hp]       bf16
    u1_ref,      # [Hp, Hp]      bf16
    w2_ref,      # [Hp, Hp]      bf16
    u2_ref,      # [Hp, Hp]      bf16
    b2_ref,      # [1, Hp]       f32
    w_out_ref,   # [Hp, F]       bf16
    b_out_ref,   # [1, F]        f32
    out_ref,     # [Tc, Bb, F]   output TF frames (time chunk)
    h1n_ref,     # [Bb, Hp]      carried / next state 1 (f32)
    h2n_ref,     # [Bb, Hp]      carried / next state 2 (f32)
    xz_ref,      # scratch [Tc, Bb, Hp] f32 : hoisted input projection
    h2a_ref,     # scratch [Tc, Bb, Hp] f32 : per-step layer-2 states
    *, T_valid, time_chunk, needs_time_mask):
    Tc, Bb, F = mix_ref.shape
    Hp = h1n_ref.shape[-1]

    c = pl.program_id(1)

    # Recurrent state is carried across time chunks in the VMEM-resident
    # next-state outputs (block index constant along the chunk axis).
    @pl.when(c == 0)
    def _():
        h1n_ref[...] = h1_ref[...]
        h2n_ref[...] = h2_ref[...]

    # Hoisted input projection for the whole chunk: one large bf16 MXU matmul,
    # plus the chunk-invariant conditioning bias (precomputed in the wrapper).
    x2d = mix_ref[...].astype(jnp.bfloat16).reshape(Tc * Bb, F)
    xz = jnp.dot(x2d, w_in_ref[...], preferred_element_type=jnp.float32)
    xz_ref[...] = xz.reshape(Tc, Bb, Hp) + embp_ref[...][None, :, :]

    chunk_start = c * time_chunk

    def step(t, carry):
        h1, h2 = carry
        # [Bb, Hp] tile-aligned scratch read; 3 small bf16 MXU dots per step.
        z1 = xz_ref[t] + jnp.dot(h1.astype(jnp.bfloat16), u1_ref[...],
                                 preferred_element_type=jnp.float32)
        h1_new = jnp.tanh(z1)
        z2 = (jnp.dot(h1_new.astype(jnp.bfloat16), w2_ref[...],
                      preferred_element_type=jnp.float32)
              + jnp.dot(h2.astype(jnp.bfloat16), u2_ref[...],
                        preferred_element_type=jnp.float32)
              + b2_ref[...])
        h2_new = jnp.tanh(z2)
        h2a_ref[t] = h2_new                      # tile-aligned scratch write
        if needs_time_mask:
            # Padded tail steps (t_global >= T): keep the carried state fixed
            # so the returned next-state is the state after exactly T steps.
            valid = (chunk_start + t) < T_valid
            h1_new = jnp.where(valid, h1_new, h1)
            h2_new = jnp.where(valid, h2_new, h2)
        return (h1_new, h2_new)

    h1_f, h2_f = jax.lax.fori_loop(
        0, Tc, step, (h1n_ref[...], h2n_ref[...]), unroll=min(8, Tc))

    h1n_ref[...] = h1_f
    h2n_ref[...] = h2_f

    # Hoisted output projection: one large bf16 MXU matmul + one bulk store.
    y = (jnp.dot(h2a_ref[...].reshape(Tc * Bb, Hp).astype(jnp.bfloat16),
                 w_out_ref[...], preferred_element_type=jnp.float32)
         + b_out_ref[...])
    out_ref[...] = y.reshape(Tc, Bb, F).astype(out_ref.dtype)


# ------------------------------ JAX wrapper ------------------------------- #

def tfgridnet_stream(mix, embedding, buffers, params):
    """mix: [B, T, F]; embedding: [B, E]; buffers: (h1 [B, H], h2 [B, H])."""
    B, T, F = mix.shape
    h1, h2 = buffers
    H = h1.shape[-1]
    (w_in, w_emb, u1, b1, w2, u2, b2, w_out, b_out) = params

    f32, bf16 = jnp.float32, jnp.bfloat16

    Hp = _round_up(H, LANE)

    # Batch tiling: one tile for small batches; two tiles once the batch is
    # large enough so the two v7x TensorCores each take half ("parallel" axis).
    if B > SUBLANE:
        Bp = _round_up(B, 2 * SUBLANE)
        num_b_tiles = 2
    else:
        Bp = SUBLANE
        num_b_tiles = 1
    Bb = Bp // num_b_tiles

    # Time chunking: sublane-aligned chunk, T padded up to a chunk multiple;
    # padded tail steps are masked inside the kernel (state stays exact).
    Tc = min(MAX_TIME_CHUNK, _round_up(T, SUBLANE))
    Tp = _round_up(T, Tc)
    num_chunks = Tp // Tc
    needs_time_mask = (Tp != T)

    # Chunk-invariant conditioning bias, computed ONCE in plain XLA and passed
    # as a tiny [Bp, Hp] input (w_emb never enters the kernel).
    emb_proj = embedding.astype(f32) @ w_emb.astype(f32) + b1.astype(f32)
    emb_proj_p = _pad_to(emb_proj, (Bp, Hp))

    # Time-major layout so each chunk block is [Tc, Bb, F] and per-step VMEM
    # accesses are full-tile.  F stays UNPADDED (block last dim == full dim).
    # NOTE: padded batch rows / padded tail steps compute garbage that is
    # sliced away below; the valid region is exact.
    mix_tm = jnp.transpose(mix, (1, 0, 2))                  # [T, B, F]
    mix_p = _pad_to(mix_tm, (Tp, Bp, F))

    h1_p = _pad_to(h1.astype(f32), (Bp, Hp))
    h2_p = _pad_to(h2.astype(f32), (Bp, Hp))

    # bf16 weights (MXU-native); zero padding preserves the math in the valid
    # region (padded H lanes stay exactly 0 through tanh).
    w_in_p = _pad_to(w_in.astype(bf16), (F, Hp))
    u1_p = _pad_to(u1.astype(bf16), (Hp, Hp))
    w2_p = _pad_to(w2.astype(bf16), (Hp, Hp))
    u2_p = _pad_to(u2.astype(bf16), (Hp, Hp))
    b2_p = _pad_to(b2.astype(f32), (1, Hp))
    w_out_p = _pad_to(w_out.astype(bf16), (Hp, F))
    b_out_p = b_out.astype(f32).reshape(1, F)

    # Explicit VMEM budget (double-buffered chunks + weights + scratch).
    est = (2 * 2 * Tc * Bb * F * 4                      # mix + out blocks
           + 2 * ((F * Hp + 3 * Hp * Hp + Hp * F) * 2   # bf16 weights
                  + (Hp + F) * 4)                       # biases
           + 2 * 5 * Bb * Hp * 4                        # embp/h1/h2/h1n/h2n
           + 2 * Tc * Bb * Hp * 4)                      # scratch
    vmem_limit = int(min(max(2 * est + (2 << 20), 16 << 20), 56 << 20))

    kernel = functools.partial(
        tfgridnet_stream_kernel,
        T_valid=T, time_chunk=Tc, needs_time_mask=needs_time_mask)

    def const_spec(shape):
        return pl.BlockSpec(shape, lambda b, c: tuple(0 for _ in shape))

    out_p, h1n_p, h2n_p = pl.pallas_call(
        kernel,
        grid=(num_b_tiles, num_chunks),
        in_specs=[
            pl.BlockSpec((Tc, Bb, F), lambda b, c: (c, b, 0)),   # mix chunk
            pl.BlockSpec((Bb, Hp), lambda b, c: (b, 0)),         # emb_proj
            pl.BlockSpec((Bb, Hp), lambda b, c: (b, 0)),         # h1 init
            pl.BlockSpec((Bb, Hp), lambda b, c: (b, 0)),         # h2 init
            const_spec((F, Hp)),                                 # w_in
            const_spec((Hp, Hp)),                                # u1
            const_spec((Hp, Hp)),                                # w2
            const_spec((Hp, Hp)),                                # u2
            const_spec((1, Hp)),                                 # b2
            const_spec((Hp, F)),                                 # w_out
            const_spec((1, F)),                                  # b_out
        ],
        out_specs=(
            pl.BlockSpec((Tc, Bb, F), lambda b, c: (c, b, 0)),   # out chunk
            pl.BlockSpec((Bb, Hp), lambda b, c: (b, 0)),         # next h1
            pl.BlockSpec((Bb, Hp), lambda b, c: (b, 0)),         # next h2
        ),
        out_shape=(
            jax.ShapeDtypeStruct((Tp, Bp, F), mix.dtype),
            jax.ShapeDtypeStruct((Bp, Hp), jnp.float32),
            jax.ShapeDtypeStruct((Bp, Hp), jnp.float32),
        ),
        scratch_shapes=[
            pltpu.VMEM((Tc, Bb, Hp), jnp.float32),   # hoisted input projection
            pltpu.VMEM((Tc, Bb, Hp), jnp.float32),   # per-step layer-2 states
        ],
        compiler_params=pltpu.CompilerParams(
            dimension_semantics=("parallel", "arbitrary"),
            vmem_limit_bytes=vmem_limit),
    )(mix_p, emb_proj_p, h1_p, h2_p, w_in_p, u1_p, w2_p, u2_p, b2_p,
      w_out_p, b_out_p)

    outputs = jnp.transpose(out_p[:T, :B, :], (1, 0, 2))     # [B, T, F]
    next_state = {"inter_rnn_h1": h1n_p[:B, :H].astype(h1.dtype),
                  "inter_rnn_h2": h2n_p[:B, :H].astype(h2.dtype)}
    return outputs, next_state


# -------------------- Pure-JAX reference (same math, f32) ------------------ #

def tfgridnet_stream_reference(mix, embedding, buffers, params):
    w_in, w_emb, u1, b1, w2, u2, b2, w_out, b_out = params
    h1, h2 = buffers
    emb_proj = embedding @ w_emb + b1
    outs = []
    for t in range(mix.shape[1]):
        x = mix[:, t, :]
        h1 = jnp.tanh(x @ w_in + h1 @ u1 + emb_proj)
        h2 = jnp.tanh(h1 @ w2 + h2 @ u2 + b2)
        outs.append(h2 @ w_out + b_out)
    return (jnp.stack(outs, axis=1),
            {"inter_rnn_h1": h1, "inter_rnn_h2": h2})


# ---------------- MyModel equivalent (state-buffer flattening) ------------- #

STATE_ORDER = ("inter_rnn_h1", "inter_rnn_h2")


def unflatten_state_buffers(order, buffers):
    return dict(zip(order, buffers))


def flatten_state_buffers(state):
    names = list(state.keys())
    return names, [state[n] for n in names]


def make_params(F, E, H, dtype=jnp.float32):
    keys = jax.random.split(jax.random.PRNGKey(0), 9)
    s = 0.1
    return (
        s * jax.random.normal(keys[0], (F, H), dtype),  # w_in
        s * jax.random.normal(keys[1], (E, H), dtype),  # w_emb
        s * jax.random.normal(keys[2], (H, H), dtype),  # u1
        s * jax.random.normal(keys[3], (1, H), dtype),  # b1
        s * jax.random.normal(keys[4], (H, H), dtype),  # w2
        s * jax.random.normal(keys[5], (H, H), dtype),  # u2
        s * jax.random.normal(keys[6], (1, H), dtype),  # b2
        s * jax.random.normal(keys[7], (H, F), dtype),  # w_out
        s * jax.random.normal(keys[8], (1, F), dtype),  # b_out
    )


def my_model_forward(params, mix, embedding, *buffers):
    """Pallas equivalent of MyModel.forward: returns (outputs, *next_states)."""
    state_dict = unflatten_state_buffers(STATE_ORDER, buffers)
    ordered_buffers = tuple(state_dict[n] for n in STATE_ORDER)
    outputs, next_state = tfgridnet_stream(mix, embedding, ordered_buffers,
                                           params)
    _, next_states = flatten_state_buffers(next_state)
    return (outputs, *next_states)


# TODO(synk): the real TFGridNet (STFT/iSTFT, intra-frequency LSTM blocks,
# full-band self-attention) is opaque in the provided source; this kernel
# implements a representative embedding-conditioned streaming recurrent TF
# block with the same (mix, embedding, *buffers) -> (out, *next_buffers)
# streaming interface.


if __name__ == "__main__":
    B, T, F, E, H = 2, 8, 32, 16, 32

    key = jax.random.PRNGKey(0)
    k_mix, k_emb = jax.random.split(key, 2)
    mix = jax.random.normal(k_mix, (B, T, F), jnp.float32)
    embedding = jax.random.normal(k_emb, (B, E), jnp.float32)
    h1 = jnp.zeros((B, H), jnp.float32)
    h2 = jnp.zeros((B, H), jnp.float32)

    params = make_params(F, E, H)

    fwd = jax.jit(lambda m, e, b1_, b2_: my_model_forward(params, m, e, b1_, b2_))
    outputs, h1_next, h2_next = fwd(mix, embedding, h1, h2)
    jax.block_until_ready((outputs, h1_next, h2_next))

    assert outputs.shape == (B, T, F)
    assert h1_next.shape == (B, H) and h2_next.shape == (B, H)

    # Validate against the plain-JAX f32 reference of the same streaming block.
    # Kernel matmul operands are bf16 (f32 accumulation / state), so a slightly
    # looser tolerance is used.
    ref_out, ref_state = tfgridnet_stream_reference(
        mix, embedding, (h1, h2), params)
    assert np.allclose(np.asarray(outputs), np.asarray(ref_out),
                       rtol=5e-2, atol=5e-2)
    assert np.allclose(np.asarray(h1_next),
                       np.asarray(ref_state["inter_rnn_h1"]),
                       rtol=5e-2, atol=5e-2)
    assert np.allclose(np.asarray(h2_next),
                       np.asarray(ref_state["inter_rnn_h2"]),
                       rtol=5e-2, atol=5e-2)

    print("KERNEL_OK")
</pallas_src>

<mosaic_0001>
module attributes {stable_mosaic.version = 11 : i64} {
  func.func @tfgridnet_stream_kernel(%arg0: i32, %arg1: i32, %arg2: memref<8x8x32xf32, #tpu.memory_space<vmem>>, %arg3: memref<8x128xf32, #tpu.memory_space<vmem>>, %arg4: memref<8x128xf32, #tpu.memory_space<vmem>>, %arg5: memref<8x128xf32, #tpu.memory_space<vmem>>, %arg6: memref<32x128xbf16, #tpu.memory_space<vmem>>, %arg7: memref<128x128xbf16, #tpu.memory_space<vmem>>, %arg8: memref<128x128xbf16, #tpu.memory_space<vmem>>, %arg9: memref<128x128xbf16, #tpu.memory_space<vmem>>, %arg10: memref<1x128xf32, #tpu.memory_space<vmem>>, %arg11: memref<128x32xbf16, #tpu.memory_space<vmem>>, %arg12: memref<1x32xf32, #tpu.memory_space<vmem>>, %arg13: memref<8x8x32xf32, #tpu.memory_space<vmem>>, %arg14: memref<8x128xf32, #tpu.memory_space<vmem>>, %arg15: memref<8x128xf32, #tpu.memory_space<vmem>>, %arg16: memref<8x8x128xf32, #tpu.memory_space<vmem>>, %arg17: memref<8x8x128xf32, #tpu.memory_space<vmem>>) attributes {dimension_semantics = [#tpu.dimension_semantics<parallel>, #tpu.dimension_semantics<arbitrary>], iteration_bounds = array<i64: 1, 1>, scalar_prefetch = 0 : i64, scratch_operands = 2 : i64, tpu.core_type = #tpu.core_type<tc>, window_params = [{transform_indices = @transform_0, window_bounds = array<i64: 8, 8, 32>}, {transform_indices = @transform_1, window_bounds = array<i64: 8, 128>}, {transform_indices = @transform_2, window_bounds = array<i64: 8, 128>}, {transform_indices = @transform_3, window_bounds = array<i64: 8, 128>}, {pipeline_mode = #tpu.pipeline_mode<synchronous>, transform_indices = @transform_4, window_bounds = array<i64: 32, 128>}, {pipeline_mode = #tpu.pipeline_mode<synchronous>, transform_indices = @transform_5, window_bounds = array<i64: 128, 128>}, {pipeline_mode = #tpu.pipeline_mode<synchronous>, transform_indices = @transform_6, window_bounds = array<i64: 128, 128>}, {pipeline_mode = #tpu.pipeline_mode<synchronous>, transform_indices = @transform_7, window_bounds = array<i64: 128, 128>}, {pipeline_mode = #tpu.pipeline_mode<synchronous>, transform_indices = @transform_8, window_bounds = array<i64: 1, 128>}, {pipeline_mode = #tpu.pipeline_mode<synchronous>, transform_indices = @transform_9, window_bounds = array<i64: 128, 32>}, {pipeline_mode = #tpu.pipeline_mode<synchronous>, transform_indices = @transform_10, window_bounds = array<i64: 1, 32>}, {transform_indices = @transform_11, window_bounds = array<i64: 8, 8, 32>}, {transform_indices = @transform_12, window_bounds = array<i64: 8, 128>}, {transform_indices = @transform_13, window_bounds = array<i64: 8, 128>}]} {
    %c0_i32 = arith.constant 0 : i32
    %0 = arith.cmpi eq, %arg1, %c0_i32 : i32
    %1 = arith.extui %0 : i1 to i32
    %c0_i32_0 = arith.constant 0 : i32
    %2 = arith.cmpi ne, %1, %c0_i32_0 : i32
    scf.if %2 {
      %c0_150 = arith.constant 0 : index
      %c0_151 = arith.constant 0 : index
      %212 = vector.load %arg4[%c0_150, %c0_151] : memref<8x128xf32, #tpu.memory_space<vmem>>, vector<8x128xf32>
      %c0_152 = arith.constant 0 : index
      %c0_153 = arith.constant 0 : index
      %213 = vector.load %arg14[%c0_152, %c0_153] : memref<8x128xf32, #tpu.memory_space<vmem>>, vector<8x128xf32>
      tpu.vector_store %arg14[%c0_152, %c0_153], %212 {strides = array<i32>} : memref<8x128xf32, #tpu.memory_space<vmem>>, vector<8x128xf32>,
      %c0_154 = arith.constant 0 : index
      %c0_155 = arith.constant 0 : index
      %214 = vector.load %arg5[%c0_154, %c0_155] : memref<8x128xf32, #tpu.memory_space<vmem>>, vector<8x128xf32>
      %c0_156 = arith.constant 0 : index
      %c0_157 = arith.constant 0 : index
      %215 = vector.load %arg15[%c0_156, %c0_157] : memref<8x128xf32, #tpu.memory_space<vmem>>, vector<8x128xf32>
      tpu.vector_store %arg15[%c0_156, %c0_157], %214 {strides = array<i32>} : memref<8x128xf32, #tpu.memory_space<vmem>>, vector<8x128xf32>,
    } else {
    }
    %c0 = arith.constant 0 : index
    %c0_1 = arith.constant 0 : index
    %c0_2 = arith.constant 0 : index
    %3 = vector.load %arg2[%c0, %c0_1, %c0_2] : memref<8x8x32xf32, #tpu.memory_space<vmem>>, vector<8x8x32xf32>
    %4 = arith.truncf %3 : vector<8x8x32xf32> to vector<8x8x32xbf16>
    %5 = vector.shape_cast %4 : vector<8x8x32xbf16> to vector<64x32xbf16>
    %c0_3 = arith.constant 0 : index
    %c0_4 = arith.constant 0 : index
    %6 = vector.load %arg6[%c0_3, %c0_4] : memref<32x128xbf16, #tpu.memory_space<vmem>>, vector<32x128xbf16>
    %cst = arith.constant dense<0.000000e+00> : vector<64x128xf32>
    %7 = tpu.matmul %5, %6, %cst {dimension_numbers = #tpu.dot_dimension_numbers<[1], [0], [0], [1], [0, 0, 1, 1], [], []>} : vector<64x32xbf16>, vector<32x128xbf16>, vector<64x128xf32> -> vector<64x128xf32>
    %8 = vector.shape_cast %7 : vector<64x128xf32> to vector<8x8x128xf32>
    %c0_5 = arith.constant 0 : index
    %c0_6 = arith.constant 0 : index
    %9 = vector.load %arg3[%c0_5, %c0_6] : memref<8x128xf32, #tpu.memory_space<vmem>>, vector<8x128xf32>
    %10 = vector.shape_cast %9 : vector<8x128xf32> to vector<1x8x128xf32>
    %11 = vector.broadcast %10 : vector<1x8x128xf32> to vector<8x8x128xf32>
    %12 = arith.addf %8, %11 : vector<8x8x128xf32>
    %c0_7 = arith.constant 0 : index
    %c0_8 = arith.constant 0 : index
    %c0_9 = arith.constant 0 : index
    %13 = vector.load %arg16[%c0_7, %c0_8, %c0_9] : memref<8x8x128xf32, #tpu.memory_space<vmem>>, vector<8x8x128xf32>
    tpu.vector_store %arg16[%c0_7, %c0_8, %c0_9], %12 {strides = array<i32>} : memref<8x8x128xf32, #tpu.memory_space<vmem>>, vector<8x8x128xf32>,
    %c0_10 = arith.constant 0 : index
    %c0_11 = arith.constant 0 : index
    %14 = vector.load %arg14[%c0_10, %c0_11] : memref<8x128xf32, #tpu.memory_space<vmem>>, vector<8x128xf32>
    %c0_12 = arith.constant 0 : index
    %c0_13 = arith.constant 0 : index
    %15 = vector.load %arg15[%c0_12, %c0_13] : memref<8x128xf32, #tpu.memory_space<vmem>>, vector<8x128xf32>
    %c0_i32_14 = arith.constant 0 : i32
    %16 = arith.index_cast %c0_i32_14 : i32 to index
    %c0_15 = arith.constant 0 : index
    %c0_16 = arith.constant 0 : index
    %17 = vector.load %arg16[%16, %c0_15, %c0_16] : memref<8x8x128xf32, #tpu.memory_space<vmem>>, vector<1x8x128xf32>
    %18 = vector.shape_cast %17 : vector<1x8x128xf32> to vector<8x128xf32>
    %19 = arith.truncf %14 : vector<8x128xf32> to vector<8x128xbf16>
    %c0_17 = arith.constant 0 : index
    %c0_18 = arith.constant 0 : index
    %20 = vector.load %arg7[%c0_17, %c0_18] : memref<128x128xbf16, #tpu.memory_space<vmem>>, vector<128x128xbf16>
    %cst_19 = arith.constant dense<0.000000e+00> : vector<8x128xf32>
    %21 = tpu.matmul %19, %20, %cst_19 {dimension_numbers = #tpu.dot_dimension_numbers<[1], [0], [0], [1], [0, 0, 1, 1], [], []>} : vector<8x128xbf16>, vector<128x128xbf16>, vector<8x128xf32> -> vector<8x128xf32>
    %22 = arith.addf %18, %21 : vector<8x128xf32>
    %23 = math.tanh %22 : vector<8x128xf32>
    %24 = arith.truncf %23 : vector<8x128xf32> to vector<8x128xbf16>
    %c0_20 = arith.constant 0 : index
    %c0_21 = arith.constant 0 : index
    %25 = vector.load %arg8[%c0_20, %c0_21] : memref<128x128xbf16, #tpu.memory_space<vmem>>, vector<128x128xbf16>
    %cst_22 = arith.constant dense<0.000000e+00> : vector<8x128xf32>
    %26 = tpu.matmul %24, %25, %cst_22 {dimension_numbers = #tpu.dot_dimension_numbers<[1], [0], [0], [1], [0, 0, 1, 1], [], []>} : vector<8x128xbf16>, vector<128x128xbf16>, vector<8x128xf32> -> vector<8x128xf32>
    %27 = arith.truncf %15 : vector<8x128xf32> to vector<8x128xbf16>
    %c0_23 = arith.constant 0 : index
    %c0_24 = arith.constant 0 : index
    %28 = vector.load %arg9[%c0_23, %c0_24] : memref<128x128xbf16, #tpu.memory_space<vmem>>, vector<128x128xbf16>
    %cst_25 = arith.constant dense<0.000000e+00> : vector<8x128xf32>
    %29 = tpu.matmul %27, %28, %cst_25 {dimension_numbers = #tpu.dot_dimension_numbers<[1], [0], [0], [1], [0, 0, 1, 1], [], []>} : vector<8x128xbf16>, vector<128x128xbf16>, vector<8x128xf32> -> vector<8x128xf32>
    %30 = arith.addf %26, %29 : vector<8x128xf32>
    %c0_26 = arith.constant 0 : index
    %c0_27 = arith.constant 0 : index
    %31 = vector.load %arg10[%c0_26, %c0_27] : memref<1x128xf32, #tpu.memory_space<vmem>>, vector<1x128xf32>
    %32 = vector.broadcast %31 : vector<1x128xf32> to vector<8x128xf32>
    %33 = arith.addf %30, %32 : vector<8x128xf32>
    %34 = math.tanh %33 : vector<8x128xf32>
    %35 = arith.index_cast %c0_i32_14 : i32 to index
    %c0_28 = arith.constant 0 : index
    %c0_29 = arith.constant 0 : index
    %36 = vector.load %arg17[%35, %c0_28, %c0_29] : memref<8x8x128xf32, #tpu.memory_space<vmem>>, vector<1x8x128xf32>
    %37 = vector.shape_cast %36 : vector<1x8x128xf32> to vector<8x128xf32>
    %38 = vector.shape_cast %34 : vector<8x128xf32> to vector<1x8x128xf32>
    tpu.vector_store %arg17[%35, %c0_28, %c0_29], %38 {strides = array<i32>} : memref<8x8x128xf32, #tpu.memory_space<vmem>>, vector<1x8x128xf32>,
    %c1_i32 = arith.constant 1 : i32
    %39 = arith.index_cast %c1_i32 : i32 to index
    %c0_30 = arith.constant 0 : index
    %c0_31 = arith.constant 0 : index
    %40 = vector.load %arg16[%39, %c0_30, %c0_31] : memref<8x8x128xf32, #tpu.memory_space<vmem>>, vector<1x8x128xf32>
    %41 = vector.shape_cast %40 : vector<1x8x128xf32> to vector<8x128xf32>
    %42 = arith.truncf %23 : vector<8x128xf32> to vector<8x128xbf16>
    %c0_32 = arith.constant 0 : index
    %c0_33 = arith.constant 0 : index
    %43 = vector.load %arg7[%c0_32, %c0_33] : memref<128x128xbf16, #tpu.memory_space<vmem>>, vector<128x128xbf16>
    %cst_34 = arith.constant dense<0.000000e+00> : vector<8x128xf32>
    %44 = tpu.matmul %42, %43, %cst_34 {dimension_numbers = #tpu.dot_dimension_numbers<[1], [0], [0], [1], [0, 0, 1, 1], [], []>} : vector<8x128xbf16>, vector<128x128xbf16>, vector<8x128xf32> -> vector<8x128xf32>
    %45 = arith.addf %41, %44 : vector<8x128xf32>
    %46 = math.tanh %45 : vector<8x128xf32>
    %47 = arith.truncf %46 : vector<8x128xf32> to vector<8x128xbf16>
    %c0_35 = arith.constant 0 : index
    %c0_36 = arith.constant 0 : index
    %48 = vector.load %arg8[%c0_35, %c0_36] : memref<128x128xbf16, #tpu.memory_space<vmem>>, vector<128x128xbf16>
    %cst_37 = arith.constant dense<0.000000e+00> : vector<8x128xf32>
    %49 = tpu.matmul %47, %48, %cst_37 {dimension_numbers = #tpu.dot_dimension_numbers<[1], [0], [0], [1], [0, 0, 1, 1], [], []>} : vector<8x128xbf16>, vector<128x128xbf16>, vector<8x128xf32> -> vector<8x128xf32>
    %50 = arith.truncf %34 : vector<8x128xf32> to vector<8x128xbf16>
    %c0_38 = arith.constant 0 : index
    %c0_39 = arith.constant 0 : index
    %51 = vector.load %arg9[%c0_38, %c0_39] : memref<128x128xbf16, #tpu.memory_space<vmem>>, vector<128x128xbf16>
    %cst_40 = arith.constant dense<0.000000e+00> : vector<8x128xf32>
    %52 = tpu.matmul %50, %51, %cst_40 {dimension_numbers = #tpu.dot_dimension_numbers<[1], [0], [0], [1], [0, 0, 1, 1], [], []>} : vector<8x128xbf16>, vector<128x128xbf16>, vector<8x128xf32> -> vector<8x128xf32>
    %53 = arith.addf %49, %52 : vector<8x128xf32>
    %c0_41 = arith.constant 0 : index
    %c0_42 = arith.constant 0 : index
    %54 = vector.load %arg10[%c0_41, %c0_42] : memref<1x128xf32, #tpu.memory_space<vmem>>, vector<1x128xf32>
    %55 = vector.broadcast %54 : vector<1x128xf32> to vector<8x128xf32>
    %56 = arith.addf %53, %55 : vector<8x128xf32>
    %57 = math.tanh %56 : vector<8x128xf32>
    %58 = arith.index_cast %c1_i32 : i32 to index
    %c0_43 = arith.constant 0 : index
    %c0_44 = arith.constant 0 : index
    %59 = vector.load %arg17[%58, %c0_43, %c0_44] : memref<8x8x128xf32, #tpu.memory_space<vmem>>, vector<1x8x128xf32>
    %60 = vector.shape_cast %59 : vector<1x8x128xf32> to vector<8x128xf32>
    %61 = vector.shape_cast %57 : vector<8x128xf32> to vector<1x8x128xf32>
    tpu.vector_store %arg17[%58, %c0_43, %c0_44], %61 {strides = array<i32>} : memref<8x8x128xf32, #tpu.memory_space<vmem>>, vector<1x8x128xf32>,
    %c2_i32 = arith.constant 2 : i32
    %62 = arith.index_cast %c2_i32 : i32 to index
    %c0_45 = arith.constant 0 : index
    %c0_46 = arith.constant 0 : index
    %63 = vector.load %arg16[%62, %c0_45, %c0_46] : memref<8x8x128xf32, #tpu.memory_space<vmem>>, vector<1x8x128xf32>
    %64 = vector.shape_cast %63 : vector<1x8x128xf32> to vector<8x128xf32>
    %65 = arith.truncf %46 : vector<8x128xf32> to vector<8x128xbf16>
    %c0_47 = arith.constant 0 : index
    %c0_48 = arith.constant 0 : index
    %66 = vector.load %arg7[%c0_47, %c0_48] : memref<128x128xbf16, #tpu.memory_space<vmem>>, vector<128x128xbf16>
    %cst_49 = arith.constant dense<0.000000e+00> : vector<8x128xf32>
    %67 = tpu.matmul %65, %66, %cst_49 {dimension_numbers = #tpu.dot_dimension_numbers<[1], [0], [0], [1], [0, 0, 1, 1], [], []>} : vector<8x128xbf16>, vector<128x128xbf16>, vector<8x128xf32> -> vector<8x128xf32>
    %68 = arith.addf %64, %67 : vector<8x128xf32>
    %69 = math.tanh %68 : vector<8x128xf32>
    %70 = arith.truncf %69 : vector<8x128xf32> to vector<8x128xbf16>
    %c0_50 = arith.constant 0 : index
    %c0_51 = arith.constant 0 : index
    %71 = vector.load %arg8[%c0_50, %c0_51] : memref<128x128xbf16, #tpu.memory_space<vmem>>, vector<128x128xbf16>
    %cst_52 = arith.constant dense<0.000000e+00> : vector<8x128xf32>
    %72 = tpu.matmul %70, %71, %cst_52 {dimension_numbers = #tpu.dot_dimension_numbers<[1], [0], [0], [1], [0, 0, 1, 1], [], []>} : vector<8x128xbf16>, vector<128x128xbf16>, vector<8x128xf32> -> vector<8x128xf32>
    %73 = arith.truncf %57 : vector<8x128xf32> to vector<8x128xbf16>
    %c0_53 = arith.constant 0 : index
    %c0_54 = arith.constant 0 : index
    %74 = vector.load %arg9[%c0_53, %c0_54] : memref<128x128xbf16, #tpu.memory_space<vmem>>, vector<128x128xbf16>
    %cst_55 = arith.constant dense<0.000000e+00> : vector<8x128xf32>
    %75 = tpu.matmul %73, %74, %cst_55 {dimension_numbers = #tpu.dot_dimension_numbers<[1], [0], [0], [1], [0, 0, 1, 1], [], []>} : vector<8x128xbf16>, vector<128x128xbf16>, vector<8x128xf32> -> vector<8x128xf32>
    %76 = arith.addf %72, %75 : vector<8x128xf32>
    %c0_56 = arith.constant 0 : index
    %c0_57 = arith.constant 0 : index
    %77 = vector.load %arg10[%c0_56, %c0_57] : memref<1x128xf32, #tpu.memory_space<vmem>>, vector<1x128xf32>
    %78 = vector.broadcast %77 : vector<1x128xf32> to vector<8x128xf32>
    %79 = arith.addf %76, %78 : vector<8x128xf32>
    %80 = math.tanh %79 : vector<8x128xf32>
    %81 = arith.index_cast %c2_i32 : i32 to index
    %c0_58 = arith.constant 0 : index
    %c0_59 = arith.constant 0 : index
    %82 = vector.load %arg17[%81, %c0_58, %c0_59] : memref<8x8x128xf32, #tpu.memory_space<vmem>>, vector<1x8x128xf32>
    %83 = vector.shape_cast %82 : vector<1x8x128xf32> to vector<8x128xf32>
    %84 = vector.shape_cast %80 : vector<8x128xf32> to vector<1x8x128xf32>
    tpu.vector_store %arg17[%81, %c0_58, %c0_59], %84 {strides = array<i32>} : memref<8x8x128xf32, #tpu.memory_space<vmem>>, vector<1x8x128xf32>,
    %c3_i32 = arith.constant 3 : i32
    %85 = arith.index_cast %c3_i32 : i32 to index
    %c0_60 = arith.constant 0 : index
    %c0_61 = arith.constant 0 : index
    %86 = vector.load %arg16[%85, %c0_60, %c0_61] : memref<8x8x128xf32, #tpu.memory_space<vmem>>, vector<1x8x128xf32>
    %87 = vector.shape_cast %86 : vector<1x8x128xf32> to vector<8x128xf32>
    %88 = arith.truncf %69 : vector<8x128xf32> to vector<8x128xbf16>
    %c0_62 = arith.constant 0 : index
    %c0_63 = arith.constant 0 : index
    %89 = vector.load %arg7[%c0_62, %c0_63] : memref<128x128xbf16, #tpu.memory_space<vmem>>, vector<128x128xbf16>
    %cst_64 = arith.constant dense<0.000000e+00> : vector<8x128xf32>
    %90 = tpu.matmul %88, %89, %cst_64 {dimension_numbers = #tpu.dot_dimension_numbers<[1], [0], [0], [1], [0, 0, 1, 1], [], []>} : vector<8x128xbf16>, vector<128x128xbf16>, vector<8x128xf32> -> vector<8x128xf32>
    %91 = arith.addf %87, %90 : vector<8x128xf32>
    %92 = math.tanh %91 : vector<8x128xf32>
    %93 = arith.truncf %92 : vector<8x128xf32> to vector<8x128xbf16>
    %c0_65 = arith.constant 0 : index
    %c0_66 = arith.constant 0 : index
    %94 = vector.load %arg8[%c0_65, %c0_66] : memref<128x128xbf16, #tpu.memory_space<vmem>>, vector<128x128xbf16>
    %cst_67 = arith.constant dense<0.000000e+00> : vector<8x128xf32>
    %95 = tpu.matmul %93, %94, %cst_67 {dimension_numbers = #tpu.dot_dimension_numbers<[1], [0], [0], [1], [0, 0, 1, 1], [], []>} : vector<8x128xbf16>, vector<128x128xbf16>, vector<8x128xf32> -> vector<8x128xf32>
    %96 = arith.truncf %80 : vector<8x128xf32> to vector<8x128xbf16>
    %c0_68 = arith.constant 0 : index
    %c0_69 = arith.constant 0 : index
    %97 = vector.load %arg9[%c0_68, %c0_69] : memref<128x128xbf16, #tpu.memory_space<vmem>>, vector<128x128xbf16>
    %cst_70 = arith.constant dense<0.000000e+00> : vector<8x128xf32>
    %98 = tpu.matmul %96, %97, %cst_70 {dimension_numbers = #tpu.dot_dimension_numbers<[1], [0], [0], [1], [0, 0, 1, 1], [], []>} : vector<8x128xbf16>, vector<128x128xbf16>, vector<8x128xf32> -> vector<8x128xf32>
    %99 = arith.addf %95, %98 : vector<8x128xf32>
    %c0_71 = arith.constant 0 : index
    %c0_72 = arith.constant 0 : index
    %100 = vector.load %arg10[%c0_71, %c0_72] : memref<1x128xf32, #tpu.memory_space<vmem>>, vector<1x128xf32>
    %101 = vector.broadcast %100 : vector<1x128xf32> to vector<8x128xf32>
    %102 = arith.addf %99, %101 : vector<8x128xf32>
    %103 = math.tanh %102 : vector<8x128xf32>
    %104 = arith.index_cast %c3_i32 : i32 to index
    %c0_73 = arith.constant 0 : index
    %c0_74 = arith.constant 0 : index
    %105 = vector.load %arg17[%104, %c0_73, %c0_74] : memref<8x8x128xf32, #tpu.memory_space<vmem>>, vector<1x8x128xf32>
    %106 = vector.shape_cast %105 : vector<1x8x128xf32> to vector<8x128xf32>
    %107 = vector.shape_cast %103 : vector<8x128xf32> to vector<1x8x128xf32>
    tpu.vector_store %arg17[%104, %c0_73, %c0_74], %107 {strides = array<i32>} : memref<8x8x128xf32, #tpu.memory_space<vmem>>, vector<1x8x128xf32>,
    %c4_i32 = arith.constant 4 : i32
    %108 = arith.index_cast %c4_i32 : i32 to index
    %c0_75 = arith.constant 0 : index
    %c0_76 = arith.constant 0 : index
    %109 = vector.load %arg16[%108, %c0_75, %c0_76] : memref<8x8x128xf32, #tpu.memory_space<vmem>>, vector<1x8x128xf32>
    %110 = vector.shape_cast %109 : vector<1x8x128xf32> to vector<8x128xf32>
    %111 = arith.truncf %92 : vector<8x128xf32> to vector<8x128xbf16>
    %c0_77 = arith.constant 0 : index
    %c0_78 = arith.constant 0 : index
    %112 = vector.load %arg7[%c0_77, %c0_78] : memref<128x128xbf16, #tpu.memory_space<vmem>>, vector<128x128xbf16>
    %cst_79 = arith.constant dense<0.000000e+00> : vector<8x128xf32>
    %113 = tpu.matmul %111, %112, %cst_79 {dimension_numbers = #tpu.dot_dimension_numbers<[1], [0], [0], [1], [0, 0, 1, 1], [], []>} : vector<8x128xbf16>, vector<128x128xbf16>, vector<8x128xf32> -> vector<8x128xf32>
    %114 = arith.addf %110, %113 : vector<8x128xf32>
    %115 = math.tanh %114 : vector<8x128xf32>
    %116 = arith.truncf %115 : vector<8x128xf32> to vector<8x128xbf16>
    %c0_80 = arith.constant 0 : index
    %c0_81 = arith.constant 0 : index
    %117 = vector.load %arg8[%c0_80, %c0_81] : memref<128x128xbf16, #tpu.memory_space<vmem>>, vector<128x128xbf16>
    %cst_82 = arith.constant dense<0.000000e+00> : vector<8x128xf32>
    %118 = tpu.matmul %116, %117, %cst_82 {dimension_numbers = #tpu.dot_dimension_numbers<[1], [0], [0], [1], [0, 0, 1, 1], [], []>} : vector<8x128xbf16>, vector<128x128xbf16>, vector<8x128xf32> -> vector<8x128xf32>
    %119 = arith.truncf %103 : vector<8x128xf32> to vector<8x128xbf16>
    %c0_83 = arith.constant 0 : index
    %c0_84 = arith.constant 0 : index
    %120 = vector.load %arg9[%c0_83, %c0_84] : memref<128x128xbf16, #tpu.memory_space<vmem>>, vector<128x128xbf16>
    %cst_85 = arith.constant dense<0.000000e+00> : vector<8x128xf32>
    %121 = tpu.matmul %119, %120, %cst_85 {dimension_numbers = #tpu.dot_dimension_numbers<[1], [0], [0], [1], [0, 0, 1, 1], [], []>} : vector<8x128xbf16>, vector<128x128xbf16>, vector<8x128xf32> -> vector<8x128xf32>
    %122 = arith.addf %118, %121 : vector<8x128xf32>
    %c0_86 = arith.constant 0 : index
    %c0_87 = arith.constant 0 : index
    %123 = vector.load %arg10[%c0_86, %c0_87] : memref<1x128xf32, #tpu.memory_space<vmem>>, vector<1x128xf32>
    %124 = vector.broadcast %123 : vector<1x128xf32> to vector<8x128xf32>
    %125 = arith.addf %122, %124 : vector<8x128xf32>
    %126 = math.tanh %125 : vector<8x128xf32>
    %127 = arith.index_cast %c4_i32 : i32 to index
    %c0_88 = arith.constant 0 : index
    %c0_89 = arith.constant 0 : index
    %128 = vector.load %arg17[%127, %c0_88, %c0_89] : memref<8x8x128xf32, #tpu.memory_space<vmem>>, vector<1x8x128xf32>
    %129 = vector.shape_cast %128 : vector<1x8x128xf32> to vector<8x128xf32>
    %130 = vector.shape_cast %126 : vector<8x128xf32> to vector<1x8x128xf32>
    tpu.vector_store %arg17[%127, %c0_88, %c0_89], %130 {strides = array<i32>} : memref<8x8x128xf32, #tpu.memory_space<vmem>>, vector<1x8x128xf32>,
    %c5_i32 = arith.constant 5 : i32
    %131 = arith.index_cast %c5_i32 : i32 to index
    %c0_90 = arith.constant 0 : index
    %c0_91 = arith.constant 0 : index
    %132 = vector.load %arg16[%131, %c0_90, %c0_91] : memref<8x8x128xf32, #tpu.memory_space<vmem>>, vector<1x8x128xf32>
    %133 = vector.shape_cast %132 : vector<1x8x128xf32> to vector<8x128xf32>
    %134 = arith.truncf %115 : vector<8x128xf32> to vector<8x128xbf16>
    %c0_92 = arith.constant 0 : index
    %c0_93 = arith.constant 0 : index
    %135 = vector.load %arg7[%c0_92, %c0_93] : memref<128x128xbf16, #tpu.memory_space<vmem>>, vector<128x128xbf16>
    %cst_94 = arith.constant dense<0.000000e+00> : vector<8x128xf32>
    %136 = tpu.matmul %134, %135, %cst_94 {dimension_numbers = #tpu.dot_dimension_numbers<[1], [0], [0], [1], [0, 0, 1, 1], [], []>} : vector<8x128xbf16>, vector<128x128xbf16>, vector<8x128xf32> -> vector<8x128xf32>
    %137 = arith.addf %133, %136 : vector<8x128xf32>
    %138 = math.tanh %137 : vector<8x128xf32>
    %139 = arith.truncf %138 : vector<8x128xf32> to vector<8x128xbf16>
    %c0_95 = arith.constant 0 : index
    %c0_96 = arith.constant 0 : index
    %140 = vector.load %arg8[%c0_95, %c0_96] : memref<128x128xbf16, #tpu.memory_space<vmem>>, vector<128x128xbf16>
    %cst_97 = arith.constant dense<0.000000e+00> : vector<8x128xf32>
    %141 = tpu.matmul %139, %140, %cst_97 {dimension_numbers = #tpu.dot_dimension_numbers<[1], [0], [0], [1], [0, 0, 1, 1], [], []>} : vector<8x128xbf16>, vector<128x128xbf16>, vector<8x128xf32> -> vector<8x128xf32>
    %142 = arith.truncf %126 : vector<8x128xf32> to vector<8x128xbf16>
    %c0_98 = arith.constant 0 : index
    %c0_99 = arith.constant 0 : index
    %143 = vector.load %arg9[%c0_98, %c0_99] : memref<128x128xbf16, #tpu.memory_space<vmem>>, vector<128x128xbf16>
    %cst_100 = arith.constant dense<0.000000e+00> : vector<8x128xf32>
    %144 = tpu.matmul %142, %143, %cst_100 {dimension_numbers = #tpu.dot_dimension_numbers<[1], [0], [0], [1], [0, 0, 1, 1], [], []>} : vector<8x128xbf16>, vector<128x128xbf16>, vector<8x128xf32> -> vector<8x128xf32>
    %145 = arith.addf %141, %144 : vector<8x128xf32>
    %c0_101 = arith.constant 0 : index
    %c0_102 = arith.constant 0 : index
    %146 = vector.load %arg10[%c0_101, %c0_102] : memref<1x128xf32, #tpu.memory_space<vmem>>, vector<1x128xf32>
    %147 = vector.broadcast %146 : vector<1x128xf32> to vector<8x128xf32>
    %148 = arith.addf %145, %147 : vector<8x128xf32>
    %149 = math.tanh %148 : vector<8x128xf32>
    %150 = arith.index_cast %c5_i32 : i32 to index
    %c0_103 = arith.constant 0 : index
    %c0_104 = arith.constant 0 : index
    %151 = vector.load %arg17[%150, %c0_103, %c0_104] : memref<8x8x128xf32, #tpu.memory_space<vmem>>, vector<1x8x128xf32>
    %152 = vector.shape_cast %151 : vector<1x8x128xf32> to vector<8x128xf32>
    %153 = vector.shape_cast %149 : vector<8x128xf32> to vector<1x8x128xf32>
    tpu.vector_store %arg17[%150, %c0_103, %c0_104], %153 {strides = array<i32>} : memref<8x8x128xf32, #tpu.memory_space<vmem>>, vector<1x8x128xf32>,
    %c6_i32 = arith.constant 6 : i32
    %154 = arith.index_cast %c6_i32 : i32 to index
    %c0_105 = arith.constant 0 : index
    %c0_106 = arith.constant 0 : index
    %155 = vector.load %arg16[%154, %c0_105, %c0_106] : memref<8x8x128xf32, #tpu.memory_space<vmem>>, vector<1x8x128xf32>
    %156 = vector.shape_cast %155 : vector<1x8x128xf32> to vector<8x128xf32>
    %157 = arith.truncf %138 : vector<8x128xf32> to vector<8x128xbf16>
    %c0_107 = arith.constant 0 : index
    %c0_108 = arith.constant 0 : index
    %158 = vector.load %arg7[%c0_107, %c0_108] : memref<128x128xbf16, #tpu.memory_space<vmem>>, vector<128x128xbf16>
    %cst_109 = arith.constant dense<0.000000e+00> : vector<8x128xf32>
    %159 = tpu.matmul %157, %158, %cst_109 {dimension_numbers = #tpu.dot_dimension_numbers<[1], [0], [0], [1], [0, 0, 1, 1], [], []>} : vector<8x128xbf16>, vector<128x128xbf16>, vector<8x128xf32> -> vector<8x128xf32>
    %160 = arith.addf %156, %159 : vector<8x128xf32>
    %161 = math.tanh %160 : vector<8x128xf32>
    %162 = arith.truncf %161 : vector<8x128xf32> to vector<8x128xbf16>
    %c0_110 = arith.constant 0 : index
    %c0_111 = arith.constant 0 : index
    %163 = vector.load %arg8[%c0_110, %c0_111] : memref<128x128xbf16, #tpu.memory_space<vmem>>, vector<128x128xbf16>
    %cst_112 = arith.constant dense<0.000000e+00> : vector<8x128xf32>
    %164 = tpu.matmul %162, %163, %cst_112 {dimension_numbers = #tpu.dot_dimension_numbers<[1], [0], [0], [1], [0, 0, 1, 1], [], []>} : vector<8x128xbf16>, vector<128x128xbf16>, vector<8x128xf32> -> vector<8x128xf32>
    %165 = arith.truncf %149 : vector<8x128xf32> to vector<8x128xbf16>
    %c0_113 = arith.constant 0 : index
    %c0_114 = arith.constant 0 : index
    %166 = vector.load %arg9[%c0_113, %c0_114] : memref<128x128xbf16, #tpu.memory_space<vmem>>, vector<128x128xbf16>
    %cst_115 = arith.constant dense<0.000000e+00> : vector<8x128xf32>
    %167 = tpu.matmul %165, %166, %cst_115 {dimension_numbers = #tpu.dot_dimension_numbers<[1], [0], [0], [1], [0, 0, 1, 1], [], []>} : vector<8x128xbf16>, vector<128x128xbf16>, vector<8x128xf32> -> vector<8x128xf32>
    %168 = arith.addf %164, %167 : vector<8x128xf32>
    %c0_116 = arith.constant 0 : index
    %c0_117 = arith.constant 0 : index
    %169 = vector.load %arg10[%c0_116, %c0_117] : memref<1x128xf32, #tpu.memory_space<vmem>>, vector<1x128xf32>
    %170 = vector.broadcast %169 : vector<1x128xf32> to vector<8x128xf32>
    %171 = arith.addf %168, %170 : vector<8x128xf32>
    %172 = math.tanh %171 : vector<8x128xf32>
    %173 = arith.index_cast %c6_i32 : i32 to index
    %c0_118 = arith.constant 0 : index
    %c0_119 = arith.constant 0 : index
    %174 = vector.load %arg17[%173, %c0_118, %c0_119] : memref<8x8x128xf32, #tpu.memory_space<vmem>>, vector<1x8x128xf32>
    %175 = vector.shape_cast %174 : vector<1x8x128xf32> to vector<8x128xf32>
    %176 = vector.shape_cast %172 : vector<8x128xf32> to vector<1x8x128xf32>
    tpu.vector_store %arg17[%173, %c0_118, %c0_119], %176 {strides = array<i32>} : memref<8x8x128xf32, #tpu.memory_space<vmem>>, vector<1x8x128xf32>,
    %c7_i32 = arith.constant 7 : i32
    %177 = arith.index_cast %c7_i32 : i32 to index
    %c0_120 = arith.constant 0 : index
    %c0_121 = arith.constant 0 : index
    %178 = vector.load %arg16[%177, %c0_120, %c0_121] : memref<8x8x128xf32, #tpu.memory_space<vmem>>, vector<1x8x128xf32>
    %179 = vector.shape_cast %178 : vector<1x8x128xf32> to vector<8x128xf32>
    %180 = arith.truncf %161 : vector<8x128xf32> to vector<8x128xbf16>
    %c0_122 = arith.constant 0 : index
    %c0_123 = arith.constant 0 : index
    %181 = vector.load %arg7[%c0_122, %c0_123] : memref<128x128xbf16, #tpu.memory_space<vmem>>, vector<128x128xbf16>
    %cst_124 = arith.constant dense<0.000000e+00> : vector<8x128xf32>
    %182 = tpu.matmul %180, %181, %cst_124 {dimension_numbers = #tpu.dot_dimension_numbers<[1], [0], [0], [1], [0, 0, 1, 1], [], []>} : vector<8x128xbf16>, vector<128x128xbf16>, vector<8x128xf32> -> vector<8x128xf32>
    %183 = arith.addf %179, %182 : vector<8x128xf32>
    %184 = math.tanh %183 : vector<8x128xf32>
    %185 = arith.truncf %184 : vector<8x128xf32> to vector<8x128xbf16>
    %c0_125 = arith.constant 0 : index
    %c0_126 = arith.constant 0 : index
    %186 = vector.load %arg8[%c0_125, %c0_126] : memref<128x128xbf16, #tpu.memory_space<vmem>>, vector<128x128xbf16>
    %cst_127 = arith.constant dense<0.000000e+00> : vector<8x128xf32>
    %187 = tpu.matmul %185, %186, %cst_127 {dimension_numbers = #tpu.dot_dimension_numbers<[1], [0], [0], [1], [0, 0, 1, 1], [], []>} : vector<8x128xbf16>, vector<128x128xbf16>, vector<8x128xf32> -> vector<8x128xf32>
    %188 = arith.truncf %172 : vector<8x128xf32> to vector<8x128xbf16>
    %c0_128 = arith.constant 0 : index
    %c0_129 = arith.constant 0 : index
    %189 = vector.load %arg9[%c0_128, %c0_129] : memref<128x128xbf16, #tpu.memory_space<vmem>>, vector<128x128xbf16>
    %cst_130 = arith.constant dense<0.000000e+00> : vector<8x128xf32>
    %190 = tpu.matmul %188, %189, %cst_130 {dimension_numbers = #tpu.dot_dimension_numbers<[1], [0], [0], [1], [0, 0, 1, 1], [], []>} : vector<8x128xbf16>, vector<128x128xbf16>, vector<8x128xf32> -> vector<8x128xf32>
    %191 = arith.addf %187, %190 : vector<8x128xf32>
    %c0_131 = arith.constant 0 : index
    %c0_132 = arith.constant 0 : index
    %192 = vector.load %arg10[%c0_131, %c0_132] : memref<1x128xf32, #tpu.memory_space<vmem>>, vector<1x128xf32>
    %193 = vector.broadcast %192 : vector<1x128xf32> to vector<8x128xf32>
    %194 = arith.addf %191, %193 : vector<8x128xf32>
    %195 = math.tanh %194 : vector<8x128xf32>
    %196 = arith.index_cast %c7_i32 : i32 to index
    %c0_133 = arith.constant 0 : index
    %c0_134 = arith.constant 0 : index
    %197 = vector.load %arg17[%196, %c0_133, %c0_134] : memref<8x8x128xf32, #tpu.memory_space<vmem>>, vector<1x8x128xf32>
    %198 = vector.shape_cast %197 : vector<1x8x128xf32> to vector<8x128xf32>
    %199 = vector.shape_cast %195 : vector<8x128xf32> to vector<1x8x128xf32>
    tpu.vector_store %arg17[%196, %c0_133, %c0_134], %199 {strides = array<i32>} : memref<8x8x128xf32, #tpu.memory_space<vmem>>, vector<1x8x128xf32>,
    %c8_i32 = arith.constant 8 : i32
    %c0_135 = arith.constant 0 : index
    %c0_136 = arith.constant 0 : index
    %200 = vector.load %arg14[%c0_135, %c0_136] : memref<8x128xf32, #tpu.memory_space<vmem>>, vector<8x128xf32>
    tpu.vector_store %arg14[%c0_135, %c0_136], %184 {strides = array<i32>} : memref<8x128xf32, #tpu.memory_space<vmem>>, vector<8x128xf32>,
    %c0_137 = arith.constant 0 : index
    %c0_138 = arith.constant 0 : index
    %201 = vector.load %arg15[%c0_137, %c0_138] : memref<8x128xf32, #tpu.memory_space<vmem>>, vector<8x128xf32>
    tpu.vector_store %arg15[%c0_137, %c0_138], %195 {strides = array<i32>} : memref<8x128xf32, #tpu.memory_space<vmem>>, vector<8x128xf32>,
    %c0_139 = arith.constant 0 : index
    %c0_140 = arith.constant 0 : index
    %c0_141 = arith.constant 0 : index
    %202 = vector.load %arg17[%c0_139, %c0_140, %c0_141] : memref<8x8x128xf32, #tpu.memory_space<vmem>>, vector<8x8x128xf32>
    %203 = vector.shape_cast %202 : vector<8x8x128xf32> to vector<64x128xf32>
    %204 = arith.truncf %203 : vector<64x128xf32> to vector<64x128xbf16>
    %c0_142 = arith.constant 0 : index
    %c0_143 = arith.constant 0 : index
    %205 = vector.load %arg11[%c0_142, %c0_143] : memref<128x32xbf16, #tpu.memory_space<vmem>>, vector<128x32xbf16>
    %cst_144 = arith.constant dense<0.000000e+00> : vector<64x32xf32>
    %206 = tpu.matmul %204, %205, %cst_144 {dimension_numbers = #tpu.dot_dimension_numbers<[1], [0], [0], [1], [0, 0, 1, 1], [], []>} : vector<64x128xbf16>, vector<128x32xbf16>, vector<64x32xf32> -> vector<64x32xf32>
    %c0_145 = arith.constant 0 : index
    %c0_146 = arith.constant 0 : index
    %207 = vector.load %arg12[%c0_145, %c0_146] : memref<1x32xf32, #tpu.memory_space<vmem>>, vector<1x32xf32>
    %208 = vector.broadcast %207 : vector<1x32xf32> to vector<64x32xf32>
    %209 = arith.addf %206, %208 : vector<64x32xf32>
    %210 = vector.shape_cast %209 : vector<64x32xf32> to vector<8x8x32xf32>
    %c0_147 = arith.constant 0 : index
    %c0_148 = arith.constant 0 : index
    %c0_149 = arith.constant 0 : index
    %211 = vector.load %arg13[%c0_147, %c0_148, %c0_149] : memref<8x8x32xf32, #tpu.memory_space<vmem>>, vector<8x8x32xf32>
    tpu.vector_store %arg13[%c0_147, %c0_148, %c0_149], %210 {strides = array<i32>} : memref<8x8x32xf32, #tpu.memory_space<vmem>>, vector<8x8x32xf32>,
    return
  }
  func.func @transform_0(%arg0: i32, %arg1: i32) -> (i32, i32, i32) {
    %c0_i32 = arith.constant 0 : i32
    %c0_i32_0 = arith.constant 0 : i32
    return %arg1, %arg0, %c0_i32 : i32, i32, i32
  }
  func.func @transform_1(%arg0: i32, %arg1: i32) -> (i32, i32) {
    %c0_i32 = arith.constant 0 : i32
    %c0_i32_0 = arith.constant 0 : i32
    return %arg0, %c0_i32 : i32, i32
  }
  func.func @transform_2(%arg0: i32, %arg1: i32) -> (i32, i32) {
    %c0_i32 = arith.constant 0 : i32
    %c0_i32_0 = arith.constant 0 : i32
    return %arg0, %c0_i32 : i32, i32
  }
  func.func @transform_3(%arg0: i32, %arg1: i32) -> (i32, i32) {
    %c0_i32 = arith.constant 0 : i32
    %c0_i32_0 = arith.constant 0 : i32
    return %arg0, %c0_i32 : i32, i32
  }
  func.func @transform_4(%arg0: i32, %arg1: i32) -> (i32, i32) {
    %c0_i32 = arith.constant 0 : i32
    %c0_i32_0 = arith.constant 0 : i32
    %c0_i32_1 = arith.constant 0 : i32
    return %c0_i32, %c0_i32_0 : i32, i32
  }
  func.func @transform_5(%arg0: i32, %arg1: i32) -> (i32, i32) {
    %c0_i32 = arith.constant 0 : i32
    %c0_i32_0 = arith.constant 0 : i32
    %c0_i32_1 = arith.constant 0 : i32
    return %c0_i32, %c0_i32_0 : i32, i32
  }
  func.func @transform_6(%arg0: i32, %arg1: i32) -> (i32, i32) {
    %c0_i32 = arith.constant 0 : i32
    %c0_i32_0 = arith.constant 0 : i32
    %c0_i32_1 = arith.constant 0 : i32
    return %c0_i32, %c0_i32_0 : i32, i32
  }
  func.func @transform_7(%arg0: i32, %arg1: i32) -> (i32, i32) {
    %c0_i32 = arith.constant 0 : i32
    %c0_i32_0 = arith.constant 0 : i32
    %c0_i32_1 = arith.constant 0 : i32
    return %c0_i32, %c0_i32_0 : i32, i32
  }
  func.func @transform_8(%arg0: i32, %arg1: i32) -> (i32, i32) {
    %c0_i32 = arith.constant 0 : i32
    %c0_i32_0 = arith.constant 0 : i32
    %c0_i32_1 = arith.constant 0 : i32
    return %c0_i32, %c0_i32_0 : i32, i32
  }
  func.func @transform_9(%arg0: i32, %arg1: i32) -> (i32, i32) {
    %c0_i32 = arith.constant 0 : i32
    %c0_i32_0 = arith.constant 0 : i32
    %c0_i32_1 = arith.constant 0 : i32
    return %c0_i32, %c0_i32_0 : i32, i32
  }
  func.func @transform_10(%arg0: i32, %arg1: i32) -> (i32, i32) {
    %c0_i32 = arith.constant 0 : i32
    %c0_i32_0 = arith.constant 0 : i32
    %c0_i32_1 = arith.constant 0 : i32
    return %c0_i32, %c0_i32_0 : i32, i32
  }
  func.func @transform_11(%arg0: i32, %arg1: i32) -> (i32, i32, i32) {
    %c0_i32 = arith.constant 0 : i32
    %c0_i32_0 = arith.constant 0 : i32
    return %arg1, %arg0, %c0_i32 : i32, i32, i32
  }
  func.func @transform_12(%arg0: i32, %arg1: i32) -> (i32, i32) {
    %c0_i32 = arith.constant 0 : i32
    %c0_i32_0 = arith.constant 0 : i32
    return %arg0, %c0_i32 : i32, i32
  }
  func.func @transform_13(%arg0: i32, %arg1: i32) -> (i32, i32) {
    %c0_i32 = arith.constant 0 : i32
    %c0_i32_0 = arith.constant 0 : i32
    return %arg0, %c0_i32 : i32, i32
  }
}

</mosaic_0001>

<bundles_post_ra>
// kernel: _lambda_.1
= control target key start
LH: loop header
LB: loop body
LE: loop exit
PB: predicated region body
PF: predicated region fallthrough
CT: control target
= control target key end

     0   :  { %19 = vsyncpa [#allocation5], 0  ;;  %s3706_s0 = inlined_call_operand.vmem [shape: f32[8,8,32], index: 0, kind: input, shape index: {}]   ;;  %s3707_s1 = inlined_call_operand.vmem [shape: f32[8,128], index: 1, kind: input, shape index: {}]   ;;  %s3708_s2 = inlined_call_operand.vmem [shape: f32[8,128], index: 2, kind: input, shape index: {}]   ;;  %s3709_s3 = inlined_call_operand.vmem [shape: f32[8,128], index: 3, kind: input, shape index: {}]   ;;  %s3710_s4 = inlined_call_operand.vmem [shape: bf16[32,128], index: 4, kind: input, shape index: {}]   ;;  %s3711_s5 = inlined_call_operand.hbm [shape: bf16[128,128], index: 5, kind: input, shape index: {}]   ;;  %s3712_s6 = inlined_call_operand.hbm [shape: bf16[128,128], index: 6, kind: input, shape index: {}]   ;;  %s3713_s7 = inlined_call_operand.hbm [shape: bf16[128,128], index: 7, kind: input, shape index: {}]   ;;  %s3714_s8 = inlined_call_operand.vmem [shape: f32[1,128], index: 8, kind: input, shape index: {}]   ;;  %s3715_s9 = inlined_call_operand.vmem [shape: bf16[128,32], index: 9, kind: input, shape index: {}]   ;;  %s3716_s10 = inlined_call_operand.vmem [shape: f32[1,32], index: 10, kind: input, shape index: {}]   ;;  %s3717_s11 = inlined_call_operand.vmem [shape: f32[8,8,32], index: 11, kind: output, shape index: {0}]   ;;  %s3718_s12 = inlined_call_operand.vmem [shape: f32[8,128], index: 12, kind: output, shape index: {1}]   ;;  %s3719_s13 = inlined_call_operand.vmem [shape: f32[8,128], index: 13, kind: output, shape index: {2}]  }
   0x1   :  { %20 = vsyncpa [#allocation7], 0  ;;  %s48_s27 = sshll.u32 %s3712_s6, 4  ;;  %s3440_s28 = smov [#allocation6]   ;;  %s49_s27 = int_to_ptr.hbm [resolvable:$true] %s48_s27 }
   0x2   :  { %s50_s29 = sshll.u32 %s3440_s28, 4  ;;  %s35_s15 = sshll.u32 %s3711_s5, 4  ;;  %s51_s29 = int_to_ptr.vmem [resolvable:$true] %s50_s29  ;;  %s36_s15 = int_to_ptr.hbm [resolvable:$true] %s35_s15 }
   0x3   :  { %s3441_s16 = smov 64   ;;  %s3442_s17 = smov 4  }
   0x4   :  { %56 = dma.hbm_to_vmem [thread:$0]  %s49_s27, 1024, %s51_s29, [#allocation7], %s3441_s16, %s3441_s16, %s3442_s17  }
   0x5   :  { %s3443_s18 = smov [#allocation4]   ;;  %s61_s22 = sshll.u32 %s3713_s7, 4  ;;  %s62_s22 = int_to_ptr.hbm [resolvable:$true] %s61_s22 }
   0x6   :  { %s37_s19 = sshll.u32 %s3443_s18, 4  ;;  %s3444_s6 = smov [#allocation8]   ;;  %s38_s19 = int_to_ptr.vmem [resolvable:$true] %s37_s19 }
   0x7   :  { %43 = dma.hbm_to_vmem [thread:$0]  %s36_s15, 1024, %s38_s19, [#allocation5], %s3441_s16, %s3441_s16, %s3442_s17  }
   0x8   :  { %s63_s23 = sshll.u32 %s3444_s6, 4  ;;  %s64_s23 = int_to_ptr.vmem [resolvable:$true] %s63_s23 }
   0x9   :  { %69 = dma.hbm_to_vmem [thread:$0]  %s62_s22, 1024, %s64_s23, [#allocation7], %s3441_s16, %s3441_s16, %s3442_s17  }
   0xa   :  { %3436 = dma.done.wait [#allocation5], 1024  }
   0xb   :  { %3437 = vsyncadd [#allocation5], 4294966272 }
   0xc   :  { %3438 = dma.done.wait [#allocation7], 2048  }
   0xd   :  { %3439 = vsyncadd [#allocation7], 4294965248  ;;  %v3123_v0 = vld [vmem:[#allocation4 + $0x38] sm:$0xff]  ;;  %v3115_v1 = vld [vmem:[%s3710_s4 + $0x8] sm:$0xff]  ;;  %vm149_vm0 = vcmask 261120  }
   0xe   :  { %276 = vmatpush.bf16.msra.mxu1 %v3123_v0  ;;  %v3122_v2 = vld [vmem:[#allocation4 + $0x30] sm:$0xff]  ;;  %v97_v3 = vld [vmem:[%s3706_s0] sm:$0xff]  ;;  %168 = vmatpush.bf16.msra.mxu0 %v3115_v1  ;;  %v98_v5 = vld [vmem:[%s3706_s0 + $0x8] sm:$0xff] }
   0xf   :  { %v3114_v4 = vld [vmem:[%s3710_s4] sm:$0xff]  ;;  %v105_v6 = vpack.c.bf16 %v97_v3, %v97_v3  ;;  %3316 = vmatpush.bf16.msra.mxu2 %v3115_v1  ;;  %v106_v7 = vpack.c.bf16 %v98_v5, %v98_v5  ;;  %v3139_v8 = vld [vmem:[#allocation8 + $0x38] sm:$0xff]  ;;  %v3121_v10 = vld [vmem:[#allocation4 + $0x28] sm:$0xff] }
  0x10   :  { %373 = vmatpush.bf16.msra.mxu3 %v3139_v8  ;;  %v3138_v12 = vld [vmem:[#allocation8 + $0x30] sm:$0xff]  ;;  %v3120_v13 = vld [vmem:[#allocation4 + $0x20] sm:$0xff]  ;;  %v3137_v15 = vld [vmem:[#allocation8 + $0x28] sm:$0xff] }
  0x11   :  { %v125_v9 = vunpack.c.l.b16 %v105_v6  ;;  %v126_v11 = vunpack.c.l.b16 %v106_v7  ;;  %v3119_v16 = vld [vmem:[#allocation4 + $0x18] sm:$0xff]  ;;  %v3136_v17 = vld [vmem:[#allocation8 + $0x20] sm:$0xff]  ;;  %v3118_v18 = vld [vmem:[#allocation4 + $0x10] sm:$0xff] }
  0x12   :  { %277 = vmatpush.bf16.msra.mxu1 %v3122_v2  ;;  %169 = vmatpush.bf16.msra.mxu0 %v3114_v4  ;;  %v3135_v19 = vld [vmem:[#allocation8 + $0x18] sm:$0xff]  ;;  %v3117_v20 = vld [vmem:[#allocation4 + $0x8] sm:$0xff]  ;;  %v3134_v21 = vld [vmem:[#allocation8 + $0x10] sm:$0xff] }
  0x13   :  { %3317 = vmatpush.bf16.msra.mxu2 %v3114_v4  ;;  %v133_v14 = vpack.c.b16 %v126_v11, %v125_v9  ;;  %v3116_v22 = vld [vmem:[#allocation4] sm:$0xff]  ;;  %v3133_v24 = vld [vmem:[#allocation8 + $0x8] sm:$0xff]  ;;  %v3147_v25 = vld [vmem:[#allocation4 + $0x38] sm:$0xff] }
  0x14   :  { %374 = vmatpush.bf16.msra.mxu3 %v3138_v12  ;;  %v93_v23 = vld [vmem:[%s3708_s2] sm:$0xff]  ;;  %v3146_v28 = vld [vmem:[#allocation4 + $0x30] sm:$0xff]  ;;  %v3131_v30 = vld [vmem:[#allocation6 + $0x38] sm:$0xff] }
  0x15   :  { %2310 = vmatmul.msk.bf16.vlgmr.msra.gmra.mxu0 %vm149_vm0, %v133_v14  ;;  %v211_v26 = vpack.c.bf16 %v93_v23, %v93_v23  ;;  %v3132_v27 = vld [vmem:[#allocation8] sm:$0xff]  ;;  %v3145_v32 = vld [vmem:[#allocation4 + $0x28] sm:$0xff]  ;;  %v3130_v33 = vld [vmem:[#allocation6 + $0x30] sm:$0xff] }
  0x16   :  { %278 = vmatpush.bf16.msra.mxu1 %v3121_v10  ;;  %v95_v29 = vld [vmem:[%s3709_s3] sm:$0xff]  ;;  %v3129_v34 = vld [vmem:[#allocation6 + $0x28] sm:$0xff]  ;;  %v3127_v37 = vld [vmem:[#allocation6 + $0x18] sm:$0xff] }
  0x17   :  { %v308_v31 = vpack.c.bf16 %v95_v29, %v95_v29  ;;  %v3128_v35 = vld [vmem:[#allocation6 + $0x20] sm:$0xff]  ;;  %v3143_v38 = vld [vmem:[#allocation4 + $0x18] sm:$0xff]  ;;  %v3126_v39 = vld [vmem:[#allocation6 + $0x10] sm:$0xff] }
  0x18   :  { %375 = vmatpush.bf16.msra.mxu3 %v3137_v15  ;;  %v3144_v36 = vld [vmem:[#allocation4 + $0x20] sm:$0xff]  ;;  %v3142_v40 = vld [vmem:[#allocation4 + $0x10] sm:$0xff]  ;;  %v3125_v41 = vld [vmem:[#allocation6 + $0x8] sm:$0xff] }
  0x19   :  { %v3141_v42 = vld [vmem:[#allocation4 + $0x8] sm:$0xff]  ;;  %v3124_v43 = vld [vmem:[#allocation6] sm:$0xff]  ;;  %v3163_v45 = vld [vmem:[#allocation8 + $0x38] sm:$0xff] }
  0x1a   :  { %279 = vmatpush.bf16.msra.mxu1 %v3120_v13  ;;  %v3140_v44 = vld [vmem:[#allocation4] sm:$0xff]  ;;  %v3155_v46 = vld [vmem:[#allocation6 + $0x38] sm:$0xff]  ;;  %617 = vmatpush.bf16.msrb.mxu0 %v3163_v45  ;;  %v3162_v47 = vld [vmem:[#allocation8 + $0x30] sm:$0xff] }
  0x1b   :  { %v3154_v48 = vld [vmem:[#allocation6 + $0x30] sm:$0xff]  ;;  %v3161_v49 = vld [vmem:[#allocation8 + $0x28] sm:$0xff]  ;;  %v100_v52 = vld [vmem:[%s3706_s0 + $0x18] sm:$0xff] }
  0x1c   :  { %376 = vmatpush.bf16.msra.mxu3 %v3136_v17  ;;  %v3153_v50 = vld [vmem:[#allocation6 + $0x28] sm:$0xff]  ;;  %v99_v51 = vld [vmem:[%s3706_s0 + $0x10] sm:$0xff]  ;;  %v108_v54 = vpack.c.bf16 %v100_v52, %v100_v52  ;;  %v3160_v55 = vld [vmem:[#allocation8 + $0x20] sm:$0xff] }
  0x1d   :  { %v107_v53 = vpack.c.bf16 %v99_v51, %v99_v51  ;;  %v3152_v56 = vld [vmem:[#allocation6 + $0x20] sm:$0xff]  ;;  %v3159_v61 = vld [vmem:[#allocation8 + $0x18] sm:$0xff]  ;;  %v3158_v1 = vld [vmem:[#allocation8 + $0x10] sm:$0xff] }
  0x1e   :  { %280 = vmatpush.bf16.msra.mxu1 %v3119_v16  ;;  %618 = vmatpush.bf16.msrb.mxu0 %v3162_v47  ;;  %v128_v58 = vunpack.c.l.b16 %v108_v54  ;;  %v3552_v60 = vld [vmem:[%s3707_s1] sm:$0xff]  ;;  %v3151_v62 = vld [vmem:[#allocation6 + $0x18] sm:$0xff]  ;;  %v3157_v9 = vld [vmem:[#allocation8 + $0x8] sm:$0xff] }
  0x1f   :  { %v127_v57 = vunpack.c.l.b16 %v107_v53  ;;  %v3150_v10 = vld [vmem:[#allocation6 + $0x10] sm:$0xff]  ;;  %v3156_v11 = vld [vmem:[#allocation8] sm:$0xff]  ;;  %v3149_v12 = vld [vmem:[#allocation6 + $0x8] sm:$0xff] }
  0x20   :  { %377 = vmatpush.bf16.msra.mxu3 %v3135_v19  ;;  %v3171_v13 = vld [vmem:[#allocation4 + $0x38] sm:$0xff]  ;;  %v3148_v14 = vld [vmem:[#allocation6] sm:$0xff]  ;;  %v3170_v15 = vld [vmem:[#allocation4 + $0x30] sm:$0xff] }
  0x21   :  { %v134_v59 = vpack.c.b16 %v128_v58, %v127_v57  ;;  %v3169_v16 = vld [vmem:[#allocation4 + $0x28] sm:$0xff]  ;;  %v3168_v17 = vld [vmem:[#allocation4 + $0x20] sm:$0xff]  ;;  %v3166_v19 = vld [vmem:[#allocation4 + $0x10] sm:$0xff] }
  0x22   :  { %281 = vmatpush.bf16.msra.mxu1 %v3118_v18  ;;  %619 = vmatpush.bf16.msrb.mxu0 %v3161_v49  ;;  %v3167_v18 = vld [vmem:[#allocation4 + $0x18] sm:$0xff]  ;;  %v102_v29 = vld [vmem:[%s3706_s0 + $0x28] sm:$0xff]  ;;  %v3178_v54 = vld [vmem:[#allocation6 + $0x30] sm:$0xff] }
  0x23   :  { %v3183_v49 = vld [vmem:[#allocation8 + $0x18] sm:$0xff]  ;;  %v3182_v58 = vld [vmem:[#allocation8 + $0x10] sm:$0xff] }
  0x24   :  { %378 = vmatpush.bf16.msra.mxu3 %v3134_v21  ;;  %v104_v51 = vld [vmem:[%s3706_s0 + $0x38] sm:$0xff] }
  0x25   :  { %2311 = vmatmul.msk.bf16.gmra.mxu0 %vm149_vm0, %v134_v59  ;;  %v112_v53 = vpack.c.bf16 %v104_v51, %v104_v51  ;;  %v3205_v51 = vld [vmem:[#allocation8 + $0x8] sm:$0xff] }
  0x26   :  { %282 = vmatpush.bf16.msra.mxu1 %v3117_v20  ;;  %620 = vmatpush.bf16.msrb.mxu0 %v3160_v55  ;;  %v3165_v20 = vld [vmem:[#allocation4 + $0x8] sm:$0xff]  ;;  %v3194_v55 = vld [vmem:[#allocation4 + $0x30] sm:$0xff] }
  0x27   :  { %v132_v57 = vunpack.c.l.b16 %v112_v53  ;;  %v3212_v53 = vld [vmem:[#allocation4] sm:$0xff] }
  0x28   :  { %379 = vmatpush.bf16.msra.mxu3 %v3133_v24 }
  0x2a   :  { %283 = vmatpush.bf16.msra.mxu1 %v3116_v22  ;;  %621 = vmatpush.bf16.msrb.mxu0 %v3159_v61  ;;  %v3164_v22 = vld [vmem:[#allocation4] sm:$0xff]  ;;  %v3177_v61 = vld [vmem:[#allocation6 + $0x28] sm:$0xff] }
  0x2c   :  { %380 = vmatpush.bf16.msra.mxu3 %v3132_v27  ;;  %v101_v27 = vld [vmem:[%s3706_s0 + $0x20] sm:$0xff] }
  0x2d   :  { %284 = vmatmul.bf16.vlgmr.msra.gmra.mxu1 %v211_v26  ;;  %v3187_v26 = vld [vmem:[#allocation8 + $0x38] sm:$0xff] }
  0x2e   :  { %520 = vmatpush.bf16.msrb.mxu1 %v3147_v25  ;;  %622 = vmatpush.bf16.msrb.mxu0 %v3158_v1  ;;  %v3192_v1 = vld [vmem:[#allocation4 + $0x20] sm:$0xff] }
  0x2f   :  { %381 = vmatmul.bf16.vlgmr.msra.gmra.mxu3 %v308_v31 }
  0x30   :  { %434 = vmatpush.bf16.msrb.mxu3 %v3131_v30  ;;  %v109_v30 = vpack.c.bf16 %v101_v27, %v101_v27 }
  0x32   :  { %521 = vmatpush.bf16.msrb.mxu1 %v3146_v28  ;;  %623 = vmatpush.bf16.msrb.mxu0 %v3157_v9  ;;  %v3323_v28 = vld [vmem:[%s3714_s8] ss:$0 sm:$0xff]  ;;  %v3189_v9 = vld [vmem:[#allocation4 + $0x8] sm:$0xff] }
  0x34   :  { %435 = vmatpush.bf16.msrb.mxu3 %v3130_v33  ;;  %v110_v33 = vpack.c.bf16 %v102_v29, %v102_v29  ;;  %v3219_v29 = vld [vmem:[#allocation4 + $0x38] sm:$0xff] }
  0x36   :  { %522 = vmatpush.bf16.msrb.mxu1 %v3145_v32  ;;  %624 = vmatpush.bf16.msrb.mxu0 %v3156_v11  ;;  %v3186_v32 = vld [vmem:[#allocation8 + $0x30] sm:$0xff]  ;;  %v3188_v11 = vld [vmem:[#allocation4] sm:$0xff] }
  0x38   :  { %436 = vmatpush.bf16.msrb.mxu3 %v3129_v34  ;;  %v3179_v34 = vld [vmem:[#allocation6 + $0x38] sm:$0xff] }
  0x39   :  { %923 = vmatpush.bf16.msrb.mxu2 %v3179_v34  ;;  %v3201_v34 = vld [vmem:[#allocation6 + $0x28] sm:$0xff] }
  0x3a   :  { %523 = vmatpush.bf16.msrb.mxu1 %v3144_v36  ;;  %765 = vmatpush.bf16.msra.mxu0 %v3171_v13 }
  0x3c   :  { %437 = vmatpush.bf16.msrb.mxu3 %v3128_v35  ;;  %v3195_v35 = vld [vmem:[#allocation4 + $0x38] sm:$0xff] }
  0x3d   :  { %924 = vmatpush.bf16.msrb.mxu2 %v3178_v54  ;;  %v3204_v54 = vld [vmem:[#allocation8] sm:$0xff] }
  0x3e   :  { %524 = vmatpush.bf16.msrb.mxu1 %v3143_v38  ;;  %766 = vmatpush.bf16.msra.mxu0 %v3170_v15 }
  0x40   :  { %438 = vmatpush.bf16.msrb.mxu3 %v3127_v37  ;;  %v129_v37 = vunpack.c.l.b16 %v109_v30  ;;  %v3211_v30 = vld [vmem:[#allocation8 + $0x38] sm:$0xff] }
  0x41   :  { %925 = vmatpush.bf16.msrb.mxu2 %v3177_v61  ;;  %v3234_v61 = vld [vmem:[#allocation8 + $0x30] sm:$0xff] }
  0x42   :  { %525 = vmatpush.bf16.msrb.mxu1 %v3142_v40  ;;  %767 = vmatpush.bf16.msra.mxu0 %v3169_v16 }
  0x44   :  { %439 = vmatpush.bf16.msrb.mxu3 %v3126_v39  ;;  %v130_v39 = vunpack.c.l.b16 %v110_v33  ;;  %v3210_v33 = vld [vmem:[#allocation8 + $0x30] sm:$0xff] }
  0x46   :  { %526 = vmatpush.bf16.msrb.mxu1 %v3141_v42  ;;  %768 = vmatpush.bf16.msra.mxu0 %v3168_v17 }
  0x48   :  { %440 = vmatpush.bf16.msrb.mxu3 %v3125_v41 }
  0x4a   :  { %527 = vmatpush.bf16.msrb.mxu1 %v3140_v44  ;;  %769 = vmatpush.bf16.msra.mxu0 %v3167_v18  ;;  %v3185_v44 = vld [vmem:[#allocation8 + $0x28] sm:$0xff] }
  0x4c   :  { %441 = vmatpush.bf16.msrb.mxu3 %v3124_v43  ;;  %v135_v43 = vpack.c.b16 %v130_v39, %v129_v37  ;;  %v3200_v37 = vld [vmem:[#allocation6 + $0x20] sm:$0xff] }
  0x4d   :  { %v3208_v39 = vld [vmem:[#allocation8 + $0x20] sm:$0xff] }
  0x4e   :  { %770 = vmatpush.bf16.msra.mxu0 %v3166_v19  ;;  %862 = vmatpush.bf16.msra.mxu1 %v3187_v26 }
  0x4f   :  { %2312 = vmatmul.msk.bf16.vlgmr.msra.gmra.mxu2 %vm149_vm0, %v135_v43  ;;  %v3207_v43 = vld [vmem:[#allocation8 + $0x18] sm:$0xff] }
  0x50   :  { %678 = vmatpush.bf16.msra.mxu3 %v3155_v46  ;;  %v3184_v46 = vld [vmem:[#allocation8 + $0x20] sm:$0xff] }
  0x52   :  { %771 = vmatpush.bf16.msra.mxu0 %v3165_v20  ;;  %863 = vmatpush.bf16.msra.mxu1 %v3186_v32  ;;  %v3218_v32 = vld [vmem:[#allocation4 + $0x30] sm:$0xff] }
  0x54   :  { %679 = vmatpush.bf16.msra.mxu3 %v3154_v48 }
  0x56   :  { %772 = vmatpush.bf16.msra.mxu0 %v3164_v22  ;;  %864 = vmatpush.bf16.msra.mxu1 %v3185_v44  ;;  %v3198_v44 = vld [vmem:[#allocation6 + $0x10] sm:$0xff] }
  0x58   :  { %680 = vmatpush.bf16.msra.mxu3 %v3153_v50  ;;  %v103_v50 = vld [vmem:[%s3706_s0 + $0x30] sm:$0xff] }
  0x59   :  { %v111_v52 = vpack.c.bf16 %v103_v50, %v103_v50 }
  0x5a   :  { %865 = vmatpush.bf16.msra.mxu1 %v3184_v46  ;;  %v3206_v46 = vld [vmem:[#allocation8 + $0x10] sm:$0xff] }
  0x5c   :  { %681 = vmatpush.bf16.msra.mxu3 %v3152_v56  ;;  %v131_v56 = vunpack.c.l.b16 %v111_v52  ;;  %v3196_v52 = vld [vmem:[#allocation6] sm:$0xff] }
  0x5e   :  { %866 = vmatpush.bf16.msra.mxu1 %v3183_v49  ;;  %v136_v59 = vpack.c.b16 %v132_v57, %v131_v56  ;;  %v3213_v49 = vld [vmem:[#allocation4 + $0x8] sm:$0xff]  ;;  %v3235_v57 = vld [vmem:[#allocation8 + $0x38] sm:$0xff] }
  0x60   :  { %682 = vmatpush.bf16.msra.mxu3 %v3151_v62  ;;  %v3193_v62 = vld [vmem:[#allocation4 + $0x28] sm:$0xff]  ;;  %2313 = vmatmul.msk.bf16.gmra.mxu2 %vm149_vm0, %v136_v59  ;;  %v3243_v59 = vld [vmem:[#allocation4 + $0x38] sm:$0xff] }
  0x62   :  { %867 = vmatpush.bf16.msra.mxu1 %v3182_v58  ;;  %v3227_v58 = vld [vmem:[#allocation6 + $0x38] sm:$0xff] }
  0x64   :  { %683 = vmatpush.bf16.msra.mxu3 %v3150_v10  ;;  %v3172_v10 = vld [vmem:[#allocation6] sm:$0xff] }
  0x68   :  { %684 = vmatpush.bf16.msra.mxu3 %v3149_v12 }
  0x6c   :  { %685 = vmatpush.bf16.msra.mxu3 %v3148_v14  ;;  %v3324_v14 = vld [vmem:[%s3714_s8] ss:$0 sm:$0xff] }
  0x92   :  { %v171_v63 = vpop.f32.mrf.mxu0 }
  0x93   :  { %v192_v0 = vadd.f32 %v3552_v60, %v171_v63  ;;  %v3181_v63 = vld [vmem:[#allocation8 + $0x8] sm:$0xff] }
  0x94   :  { %868 = vmatpush.bf16.msra.mxu1 %v3181_v63  ;;  %v3242_v63 = vld [vmem:[#allocation4 + $0x30] sm:$0xff] }
  0x9a   :  { %v173_v21 = vpop.f32.mrf.mxu0 }
  0x9b   :  { %v193_v23 = vadd.f32 %v3552_v60, %v173_v21 }
  0xaa   :  { %v285_v2 = vpop.f32.mrf.mxu1 }
  0xab   :  { %v289_v3 = vadd.f32 %v285_v2, %v192_v0  ;;  %v3176_v0 = vld [vmem:[#allocation6 + $0x20] sm:$0xff] }
  0xac   :  { %v3180_v2 = vld [vmem:[#allocation8] sm:$0xff]  ;;  %926 = vmatpush.bf16.msrb.mxu2 %v3176_v0 }
  0xad   :  { %3332 = vtanh.f32 %v289_v3  ;;  %v3175_v3 = vld [vmem:[#allocation6 + $0x18] sm:$0xff]  ;;  %869 = vmatpush.bf16.msra.mxu1 %v3180_v2  ;;  %v3225_v2 = vld [vmem:[#allocation6 + $0x28] sm:$0xff] }
  0xb0   :  { %927 = vmatpush.bf16.msrb.mxu2 %v3175_v3  ;;  %v3241_v3 = vld [vmem:[#allocation4 + $0x28] sm:$0xff] }
  0xb2   :  { %v287_v4 = vpop.f32.mrf.mxu1  ;;  %v382_v7 = vpop.f32.mrf.mxu3 }
  0xb3   :  { %v3333_v5 = vpop.eup %3332  ;;  %v3191_v4 = vld [vmem:[#allocation4 + $0x18] sm:$0xff] }
  0xb4   :  { %v291_v6 = vpack.c.bf16 %v3333_v5, %v3333_v5  ;;  %v176_v5 = vpop.f32.mrf.mxu0 }
  0xb5   :  { %v194_v22 = vadd.f32 %v3552_v60, %v176_v5  ;;  %v3232_v5 = vld [vmem:[#allocation8 + $0x20] sm:$0xff] }
  0xb6   :  { %442 = vmatmul.bf16.vlgmr.msrb.gmra.mxu3 %v291_v6  ;;  %528 = vmatmul.bf16.vlgmr.msrb.gmra.mxu1 %v291_v6  ;;  %v3174_v6 = vld [vmem:[#allocation6 + $0x10] sm:$0xff] }
  0xb7   :  { %1010 = vmatpush.bf16.msrb.mxu3 %v3195_v35  ;;  %928 = vmatpush.bf16.msrb.mxu2 %v3174_v6  ;;  %v3217_v35 = vld [vmem:[#allocation4 + $0x28] sm:$0xff]  ;;  %v3224_v6 = vld [vmem:[#allocation6 + $0x20] sm:$0xff] }
  0xba   :  { %v384_v8 = vpop.f32.mrf.mxu3 }
  0xbb   :  { %1011 = vmatpush.bf16.msrb.mxu3 %v3194_v55  ;;  %v3173_v8 = vld [vmem:[#allocation6 + $0x8] sm:$0xff] }
  0xbc   :  { %929 = vmatpush.bf16.msrb.mxu2 %v3173_v8  ;;  %v3578_v12 = vpop.f32.mrf.mxu0 }
  0xbd   :  { %v195_v8 = vadd.f32 %v3552_v60, %v3578_v12 }
  0xbf   :  { %1012 = vmatpush.bf16.msrb.mxu3 %v3193_v62  ;;  %v3226_v62 = vld [vmem:[#allocation6 + $0x30] sm:$0xff] }
  0xc0   :  { %930 = vmatpush.bf16.msrb.mxu2 %v3172_v10 }
  0xc3   :  { %1013 = vmatpush.bf16.msrb.mxu3 %v3192_v1  ;;  %v3233_v1 = vld [vmem:[#allocation8 + $0x28] sm:$0xff] }
  0xc4   :  { %1255 = vmatpush.bf16.msra.mxu2 %v3219_v29  ;;  %v3221_v29 = vld [vmem:[#allocation6 + $0x8] sm:$0xff] }
  0xc7   :  { %1014 = vmatpush.bf16.msrb.mxu3 %v3191_v4 }
  0xc8   :  { %1256 = vmatpush.bf16.msra.mxu2 %v3218_v32  ;;  %v3220_v32 = vld [vmem:[#allocation6] sm:$0xff] }
  0xcc   :  { %1257 = vmatpush.bf16.msra.mxu2 %v3217_v35  ;;  %v3267_v35 = vld [vmem:[#allocation4 + $0x38] sm:$0xff] }
 0x133   :  { %v529_v24 = vpop.f32.mrf.mxu1 }
 0x134   :  { %v533_v25 = vadd.f32 %v529_v24, %v193_v23 }
 0x136   :  { %3334 = vtanh.f32 %v533_v25 }
 0x139   :  { %v443_v31 = vpop.f32.mrf.mxu3 }
 0x13a   :  { %v444_v36 = vadd.f32 %v443_v31, %v382_v7  ;;  %v3190_v7 = vld [vmem:[#allocation4 + $0x10] sm:$0xff] }
 0x13b   :  { %v531_v38 = vpop.f32.mrf.mxu1  ;;  %1015 = vmatpush.bf16.msrb.mxu3 %v3190_v7  ;;  %v3202_v31 = vld [vmem:[#allocation6 + $0x30] sm:$0xff]  ;;  %v3240_v7 = vld [vmem:[#allocation4 + $0x20] sm:$0xff] }
 0x13c   :  { %v3335_v40 = vpop.eup %3334  ;;  %v451_v41 = vadd.f32 %v3323_v28, %v444_v36  ;;  %v3203_v28 = vld [vmem:[#allocation6 + $0x38] sm:$0xff]  ;;  %v3209_v36 = vld [vmem:[#allocation8 + $0x28] sm:$0xff]  ;;  %v3216_v38 = vld [vmem:[#allocation4 + $0x20] sm:$0xff] }
 0x13d   :  { %v535_v42 = vpack.c.bf16 %v3335_v40, %v3335_v40  ;;  %1168 = vmatpush.bf16.msrb.mxu1 %v3203_v28  ;;  %1258 = vmatpush.bf16.msra.mxu2 %v3216_v38  ;;  %v3199_v40 = vld [vmem:[#allocation6 + $0x18] sm:$0xff]  ;;  %v3229_v28 = vld [vmem:[#allocation8 + $0x8] sm:$0xff]  ;;  %v3266_v38 = vld [vmem:[#allocation4 + $0x30] sm:$0xff] }
 0x13e   :  { %3336 = vtanh.f32 %v451_v41  ;;  %v3215_v41 = vld [vmem:[#allocation4 + $0x18] sm:$0xff] }
 0x13f   :  { %686 = vmatmul.bf16.vlgmr.msra.gmra.mxu3 %v535_v42 }
 0x140   :  { %1016 = vmatpush.bf16.msrb.mxu3 %v3189_v9  ;;  %v3325_v9 = vld [vmem:[%s3714_s8] ss:$0 sm:$0xff] }
 0x141   :  { %v445_v45 = vpop.f32.mrf.mxu3  ;;  %1169 = vmatpush.bf16.msrb.mxu1 %v3202_v31  ;;  %1259 = vmatpush.bf16.msra.mxu2 %v3215_v41  ;;  %v3228_v31 = vld [vmem:[#allocation8] sm:$0xff]  ;;  %v3265_v41 = vld [vmem:[#allocation4 + $0x28] sm:$0xff] }
 0x142   :  { %v3214_v45 = vld [vmem:[#allocation4 + $0x10] sm:$0xff] }
 0x144   :  { %v3567_v47 = vpop.eup %3336  ;;  %1017 = vmatpush.bf16.msrb.mxu3 %v3188_v11 }
 0x145   :  { %v552_v48 = vpack.c.bf16 %v3567_v47, %v3567_v47  ;;  %1170 = vmatpush.bf16.msrb.mxu1 %v3201_v34  ;;  %1260 = vmatpush.bf16.msra.mxu2 %v3214_v45  ;;  %v3251_v34 = vld [vmem:[#allocation6 + $0x38] sm:$0xff]  ;;  %v3264_v45 = vld [vmem:[#allocation4 + $0x20] sm:$0xff] }
 0x147   :  { %625 = vmatmul.bf16.vlgmr.msrb.gmra.mxu0 %v552_v48  ;;  %v3197_v48 = vld [vmem:[#allocation6 + $0x8] sm:$0xff] }
 0x148   :  { %1107 = vmatpush.bf16.msrb.mxu0 %v3211_v30  ;;  %1352 = vmatpush.bf16.msra.mxu3 %v3235_v57  ;;  %v3237_v30 = vld [vmem:[#allocation4 + $0x8] sm:$0xff] }
 0x149   :  { %1171 = vmatpush.bf16.msrb.mxu1 %v3200_v37  ;;  %1261 = vmatpush.bf16.msra.mxu2 %v3213_v49  ;;  %v3250_v37 = vld [vmem:[#allocation6 + $0x30] sm:$0xff]  ;;  %v3247_v49 = vld [vmem:[#allocation6 + $0x18] sm:$0xff] }
 0x14c   :  { %1108 = vmatpush.bf16.msrb.mxu0 %v3210_v33  ;;  %1353 = vmatpush.bf16.msra.mxu3 %v3234_v61  ;;  %v3236_v33 = vld [vmem:[#allocation4] sm:$0xff] }
 0x14d   :  { %1172 = vmatpush.bf16.msrb.mxu1 %v3199_v40  ;;  %1262 = vmatpush.bf16.msra.mxu2 %v3212_v53  ;;  %v3249_v40 = vld [vmem:[#allocation6 + $0x28] sm:$0xff] }
 0x150   :  { %1109 = vmatpush.bf16.msrb.mxu0 %v3209_v36  ;;  %1354 = vmatpush.bf16.msra.mxu3 %v3233_v1  ;;  %v3259_v36 = vld [vmem:[#allocation8 + $0x38] sm:$0xff] }
 0x151   :  { %1173 = vmatpush.bf16.msrb.mxu1 %v3198_v44  ;;  %v3248_v44 = vld [vmem:[#allocation6 + $0x20] sm:$0xff] }
 0x154   :  { %1110 = vmatpush.bf16.msrb.mxu0 %v3208_v39  ;;  %1355 = vmatpush.bf16.msra.mxu3 %v3232_v5  ;;  %v3258_v39 = vld [vmem:[#allocation8 + $0x30] sm:$0xff] }
 0x155   :  { %1174 = vmatpush.bf16.msrb.mxu1 %v3197_v48  ;;  %v3246_v5 = vld [vmem:[#allocation6 + $0x10] sm:$0xff] }
 0x157   :  { %773 = vmatmul.bf16.vlgmr.msra.gmra.mxu0 %v535_v42  ;;  %v3588_v42 = vpop.f32.mrf.mxu2 }
 0x158   :  { %1111 = vmatpush.bf16.msrb.mxu0 %v3207_v43  ;;  %v3257_v43 = vld [vmem:[#allocation8 + $0x28] sm:$0xff] }
 0x159   :  { %1175 = vmatpush.bf16.msrb.mxu1 %v3196_v52  ;;  %v3326_v52 = vld [vmem:[%s3714_s8] ss:$0 sm:$0xff] }
 0x15c   :  { %1112 = vmatpush.bf16.msrb.mxu0 %v3206_v46  ;;  %v3256_v46 = vld [vmem:[#allocation8 + $0x20] sm:$0xff] }
 0x15f   :  { %v3590_v50 = vpop.f32.mrf.mxu2 }
 0x160   :  { %1113 = vmatpush.bf16.msrb.mxu0 %v3205_v51  ;;  %v3263_v51 = vld [vmem:[#allocation4 + $0x18] sm:$0xff] }
 0x164   :  { %1114 = vmatpush.bf16.msrb.mxu0 %v3204_v54 }
 0x167   :  { %v3592_v56 = vpop.f32.mrf.mxu2 }
 0x168   :  { %1413 = vmatpush.bf16.msra.mxu0 %v3227_v58 }
 0x16c   :  { %1414 = vmatpush.bf16.msra.mxu0 %v3226_v62 }
 0x16f   :  { %v3594_v4 = vpop.f32.mrf.mxu2 }
 0x170   :  { %1415 = vmatpush.bf16.msra.mxu0 %v3225_v2 }
 0x174   :  { %1416 = vmatpush.bf16.msra.mxu0 %v3224_v6  ;;  %v3255_v6 = vld [vmem:[#allocation8 + $0x18] sm:$0xff] }
 0x1c2   :  { %v687_v13 = vpop.f32.mrf.mxu3 }
 0x1c4   :  { %v626_v15 = vpop.f32.mrf.mxu0 }
 0x1c5   :  { %v688_v16 = vadd.f32 %v687_v13, %v626_v15 }
 0x1c7   :  { %v695_v17 = vadd.f32 %v3324_v14, %v688_v16 }
 0x1c9   :  { %3338 = vtanh.f32 %v695_v17 }
 0x1ca   :  { %v689_v18 = vpop.f32.mrf.mxu3 }
 0x1cc   :  { %v628_v19 = vpop.f32.mrf.mxu0 }
 0x1cf   :  { %v3583_v20 = vpop.eup %3338 }
 0x1d0   :  { %v797_v21 = vpack.c.bf16 %v3583_v20, %v3583_v20 }
 0x1d2   :  { %870 = vmatmul.bf16.vlgmr.msra.gmra.mxu1 %v797_v21 }
 0x1d3   :  { %1500 = vmatpush.bf16.msra.mxu1 %v3243_v59 }
 0x1d4   :  { %v774_v23 = vpop.f32.mrf.mxu0 }
 0x1d5   :  { %v778_v24 = vadd.f32 %v774_v23, %v194_v22  ;;  %v3231_v22 = vld [vmem:[#allocation8 + $0x18] sm:$0xff] }
 0x1d6   :  { %1356 = vmatpush.bf16.msra.mxu3 %v3231_v22  ;;  %v3223_v23 = vld [vmem:[#allocation6 + $0x18] sm:$0xff]  ;;  %v3273_v22 = vld [vmem:[#allocation6 + $0x28] sm:$0xff] }
 0x1d7   :  { %3340 = vtanh.f32 %v778_v24  ;;  %1501 = vmatpush.bf16.msra.mxu1 %v3242_v63  ;;  %v3239_v24 = vld [vmem:[#allocation4 + $0x18] sm:$0xff]  ;;  %1417 = vmatpush.bf16.msra.mxu0 %v3223_v23  ;;  %v3289_v23 = vld [vmem:[#allocation4 + $0x28] sm:$0xff] }
 0x1db   :  { %1502 = vmatpush.bf16.msra.mxu1 %v3241_v3 }
 0x1dc   :  { %v776_v25 = vpop.f32.mrf.mxu0 }
 0x1dd   :  { %v3341_v26 = vpop.eup %3340  ;;  %v3230_v25 = vld [vmem:[#allocation8 + $0x10] sm:$0xff] }
 0x1de   :  { %v780_v27 = vpack.c.bf16 %v3341_v26, %v3341_v26  ;;  %1357 = vmatpush.bf16.msra.mxu3 %v3230_v25  ;;  %v3222_v26 = vld [vmem:[#allocation6 + $0x10] sm:$0xff]  ;;  %v3288_v25 = vld [vmem:[#allocation4 + $0x20] sm:$0xff] }
 0x1df   :  { %1503 = vmatpush.bf16.msra.mxu1 %v3240_v7  ;;  %1418 = vmatpush.bf16.msra.mxu0 %v3222_v26  ;;  %v3245_v7 = vld [vmem:[#allocation6 + $0x8] sm:$0xff]  ;;  %v197_v26 = vadd.f32 %v3552_v60, %v3590_v50 }
 0x1e0   :  { %931 = vmatmul.bf16.vlgmr.msrb.gmra.mxu2 %v780_v27  ;;  %1018 = vmatmul.bf16.vlgmr.msrb.gmra.mxu3 %v780_v27  ;;  %v3238_v27 = vld [vmem:[#allocation4 + $0x10] sm:$0xff] }
 0x1e1   :  { %1597 = vmatpush.bf16.msrb.mxu2 %v3259_v36 }
 0x1e2   :  { %1358 = vmatpush.bf16.msra.mxu3 %v3229_v28 }
 0x1e3   :  { %1504 = vmatpush.bf16.msra.mxu1 %v3239_v24  ;;  %1419 = vmatpush.bf16.msra.mxu0 %v3221_v29  ;;  %v3272_v24 = vld [vmem:[#allocation6 + $0x20] sm:$0xff]  ;;  %v3271_v29 = vld [vmem:[#allocation6 + $0x18] sm:$0xff] }
 0x1e5   :  { %1598 = vmatpush.bf16.msrb.mxu2 %v3258_v39  ;;  %v3269_v39 = vld [vmem:[#allocation6 + $0x8] sm:$0xff] }
 0x1e6   :  { %1359 = vmatpush.bf16.msra.mxu3 %v3228_v31  ;;  %v3287_v31 = vld [vmem:[#allocation4 + $0x18] sm:$0xff] }
 0x1e7   :  { %1505 = vmatpush.bf16.msra.mxu1 %v3238_v27  ;;  %1420 = vmatpush.bf16.msra.mxu0 %v3220_v32  ;;  %v3327_v32 = vld [vmem:[%s3714_s8] ss:$0 sm:$0xff] }
 0x1e9   :  { %1599 = vmatpush.bf16.msrb.mxu2 %v3257_v43  ;;  %v3268_v43 = vld [vmem:[#allocation6] sm:$0xff] }
 0x1ea   :  { %1658 = vmatpush.bf16.msrb.mxu3 %v3251_v34  ;;  %v3270_v34 = vld [vmem:[#allocation6 + $0x10] sm:$0xff] }
 0x1eb   :  { %1506 = vmatpush.bf16.msra.mxu1 %v3237_v30 }
 0x1ed   :  { %1600 = vmatpush.bf16.msrb.mxu2 %v3256_v46 }
 0x1ee   :  { %1659 = vmatpush.bf16.msrb.mxu3 %v3250_v37 }
 0x1ef   :  { %1507 = vmatpush.bf16.msra.mxu1 %v3236_v33 }
 0x1f1   :  { %1601 = vmatpush.bf16.msrb.mxu2 %v3255_v6 }
 0x1f2   :  { %1660 = vmatpush.bf16.msrb.mxu3 %v3249_v40 }
 0x1f6   :  { %1661 = vmatpush.bf16.msrb.mxu3 %v3248_v44 }
 0x1fa   :  { %1662 = vmatpush.bf16.msrb.mxu3 %v3247_v49  ;;  %v3314_v49 = vld [vmem:[%s3715_s9 + $0x30] sm:$0xff] }
 0x1fe   :  { %1663 = vmatpush.bf16.msrb.mxu3 %v3246_v5  ;;  %v198_v5 = vadd.f32 %v3552_v60, %v3592_v56 }
 0x202   :  { %1664 = vmatpush.bf16.msrb.mxu3 %v3245_v7 }
 0x24f   :  { %v871_v55 = vpop.f32.mrf.mxu1 }
 0x257   :  { %v873_v0 = vpop.f32.mrf.mxu1 }
 0x263   :  { %v932_v10 = vpop.f32.mrf.mxu2  ;;  %v1019_v11 = vpop.f32.mrf.mxu3 }
 0x264   :  { %v933_v13 = vadd.f32 %v932_v10, %v871_v55  ;;  %v1023_v14 = vadd.f32 %v1019_v11, %v195_v8  ;;  %v196_v55 = vadd.f32 %v3552_v60, %v3588_v42  ;;  %v3262_v42 = vld [vmem:[#allocation4 + $0x10] sm:$0xff]  ;;  %v3261_v8 = vld [vmem:[#allocation4 + $0x8] sm:$0xff]  ;;  %v3244_v10 = vld [vmem:[#allocation6] sm:$0xff] }
 0x265   :  { %v3260_v11 = vld [vmem:[#allocation4] sm:$0xff]  ;;  %1665 = vmatpush.bf16.msrb.mxu3 %v3244_v10 }
 0x266   :  { %v940_v15 = vadd.f32 %v3325_v9, %v933_v13  ;;  %3342 = vtanh.f32 %v1023_v14  ;;  %v3254_v9 = vld [vmem:[#allocation8 + $0x10] sm:$0xff]  ;;  %v3253_v13 = vld [vmem:[#allocation8 + $0x8] sm:$0xff]  ;;  %v3252_v14 = vld [vmem:[#allocation8] sm:$0xff] }
 0x267   :  { %1602 = vmatpush.bf16.msrb.mxu2 %v3254_v9 }
 0x268   :  { %3344 = vtanh.f32 %v940_v15  ;;  %v3275_v15 = vld [vmem:[#allocation6 + $0x38] sm:$0xff] }
 0x26b   :  { %v934_v16 = vpop.f32.mrf.mxu2  ;;  %v1021_v17 = vpop.f32.mrf.mxu3  ;;  %1603 = vmatpush.bf16.msrb.mxu2 %v3253_v13 }
 0x26c   :  { %v3343_v18 = vpop.eup %3342  ;;  %v3291_v16 = vld [vmem:[#allocation4 + $0x38] sm:$0xff]  ;;  %v3274_v17 = vld [vmem:[#allocation6 + $0x30] sm:$0xff] }
 0x26d   :  { %v1025_v19 = vpack.c.bf16 %v3343_v18, %v3343_v18  ;;  %v3290_v18 = vld [vmem:[#allocation4 + $0x30] sm:$0xff] }
 0x26e   :  { %v3601_v21 = vpop.eup %3344 }
 0x26f   :  { %1176 = vmatmul.bf16.vlgmr.msrb.gmra.mxu1 %v1025_v19  ;;  %1263 = vmatmul.bf16.vlgmr.msra.gmra.mxu2 %v1025_v19  ;;  %v1042_v12 = vpack.c.bf16 %v3601_v21, %v3601_v21  ;;  %v3283_v19 = vld [vmem:[#allocation8 + $0x38] sm:$0xff] }
 0x270   :  { %1604 = vmatpush.bf16.msrb.mxu2 %v3252_v14  ;;  %1842 = vmatpush.bf16.msrb.mxu1 %v3283_v19  ;;  %v2179_v19 = vpack.c.bf16 %v3583_v20, %v3567_v47  ;;  %v3294_v20 = vld [vmem:[#allocation6 + $0x10] sm:$0xff] }
 0x271   :  { %1115 = vmatmul.bf16.vlgmr.msrb.gmra.mxu0 %v1042_v12  ;;  %v3282_v12 = vld [vmem:[#allocation8 + $0x30] sm:$0xff] }
 0x272   :  { %1745 = vmatpush.bf16.msrb.mxu0 %v3267_v35 }
 0x274   :  { %1903 = vmatpush.bf16.msra.mxu2 %v3275_v15  ;;  %1843 = vmatpush.bf16.msrb.mxu1 %v3282_v12  ;;  %v3299_v12 = vld [vmem:[#allocation6 + $0x38] sm:$0xff] }
 0x276   :  { %1746 = vmatpush.bf16.msrb.mxu0 %v3266_v38 }
 0x278   :  { %1904 = vmatpush.bf16.msra.mxu2 %v3274_v17 }
 0x27a   :  { %1747 = vmatpush.bf16.msrb.mxu0 %v3265_v41 }
 0x27c   :  { %1905 = vmatpush.bf16.msra.mxu2 %v3273_v22  ;;  %v3307_v22 = vld [vmem:[#allocation8 + $0x38] sm:$0xff] }
 0x27e   :  { %1748 = vmatpush.bf16.msrb.mxu0 %v3264_v45  ;;  %v3315_v45 = vld [vmem:[%s3715_s9 + $0x38] sm:$0xff] }
 0x280   :  { %1906 = vmatpush.bf16.msra.mxu2 %v3272_v24  ;;  %v3306_v24 = vld [vmem:[#allocation8 + $0x30] sm:$0xff] }
 0x282   :  { %1749 = vmatpush.bf16.msrb.mxu0 %v3263_v51  ;;  %v3281_v51 = vld [vmem:[#allocation8 + $0x28] sm:$0xff] }
 0x283   :  { %1844 = vmatpush.bf16.msrb.mxu1 %v3281_v51 }
 0x284   :  { %1907 = vmatpush.bf16.msra.mxu2 %v3271_v29  ;;  %v3295_v29 = vld [vmem:[#allocation6 + $0x18] sm:$0xff] }
 0x286   :  { %1750 = vmatpush.bf16.msrb.mxu0 %v3262_v42 }
 0x288   :  { %1908 = vmatpush.bf16.msra.mxu2 %v3270_v34  ;;  %v3302_v34 = vld [vmem:[#allocation8 + $0x10] sm:$0xff] }
 0x28a   :  { %1751 = vmatpush.bf16.msrb.mxu0 %v3261_v8 }
 0x28c   :  { %1909 = vmatpush.bf16.msra.mxu2 %v3269_v39 }
 0x28e   :  { %1752 = vmatpush.bf16.msrb.mxu0 %v3260_v11  ;;  %v3328_v11 = vld [vmem:[%s3714_s8] ss:$0 sm:$0xff] }
 0x290   :  { %1910 = vmatpush.bf16.msra.mxu2 %v3268_v43 }
 0x2ec   :  { %v1177_v48 = vpop.f32.mrf.mxu1 }
 0x2ee   :  { %v1116_v53 = vpop.f32.mrf.mxu0 }
 0x2ef   :  { %v1178_v54 = vadd.f32 %v1177_v48, %v1116_v53  ;;  %v3286_v48 = vld [vmem:[#allocation4 + $0x10] sm:$0xff]  ;;  %v3313_v53 = vld [vmem:[%s3715_s9 + $0x28] sm:$0xff] }
 0x2f1   :  { %v1185_v57 = vadd.f32 %v3326_v52, %v1178_v54  ;;  %v3285_v52 = vld [vmem:[#allocation4 + $0x8] sm:$0xff]  ;;  %v3280_v54 = vld [vmem:[#allocation8 + $0x20] sm:$0xff] }
 0x2f2   :  { %v1264_v58 = vpop.f32.mrf.mxu2  ;;  %1845 = vmatpush.bf16.msrb.mxu1 %v3280_v54 }
 0x2f3   :  { %3346 = vtanh.f32 %v1185_v57  ;;  %v1268_v59 = vadd.f32 %v1264_v58, %v196_v55  ;;  %v3284_v55 = vld [vmem:[#allocation4] sm:$0xff]  ;;  %v3279_v58 = vld [vmem:[#allocation8 + $0x18] sm:$0xff] }
 0x2f4   :  { %v1179_v61 = vpop.f32.mrf.mxu1  ;;  %v3312_v57 = vld [vmem:[%s3715_s9 + $0x20] sm:$0xff] }
 0x2f5   :  { %3348 = vtanh.f32 %v1268_v59  ;;  %v3311_v59 = vld [vmem:[%s3715_s9 + $0x18] sm:$0xff]  ;;  %v3278_v61 = vld [vmem:[#allocation8 + $0x10] sm:$0xff] }
 0x2f6   :  { %v1118_v62 = vpop.f32.mrf.mxu0  ;;  %1846 = vmatpush.bf16.msrb.mxu1 %v3279_v58 }
 0x2f7   :  { %v3310_v62 = vld [vmem:[%s3715_s9 + $0x10] sm:$0xff] }
 0x2f9   :  { %v3610_v63 = vpop.eup %3346 }
 0x2fa   :  { %v1266_v0 = vpop.f32.mrf.mxu2  ;;  %v1287_v1 = vpack.c.bf16 %v3610_v63, %v3610_v63  ;;  %1847 = vmatpush.bf16.msrb.mxu1 %v3278_v61 }
 0x2fb   :  { %v3349_v2 = vpop.eup %3348  ;;  %v3277_v0 = vld [vmem:[#allocation8 + $0x8] sm:$0xff] }
 0x2fc   :  { %v1270_v3 = vpack.c.bf16 %v3349_v2, %v3349_v2  ;;  %1360 = vmatmul.bf16.vlgmr.msra.gmra.mxu3 %v1287_v1  ;;  %v3309_v1 = vld [vmem:[%s3715_s9 + $0x8] sm:$0xff]  ;;  %v3276_v2 = vld [vmem:[#allocation8] sm:$0xff] }
 0x2fd   :  { %1990 = vmatpush.bf16.msra.mxu3 %v3291_v16 }
 0x2fe   :  { %1421 = vmatmul.bf16.vlgmr.msra.gmra.mxu0 %v1270_v3  ;;  %1508 = vmatmul.bf16.vlgmr.msra.gmra.mxu1 %v1270_v3  ;;  %v3308_v3 = vld [vmem:[%s3715_s9] sm:$0xff] }
 0x2ff   :  { %1848 = vmatpush.bf16.msrb.mxu1 %v3277_v0  ;;  %2087 = vmatpush.bf16.msra.mxu0 %v3307_v22 }
 0x301   :  { %1991 = vmatpush.bf16.msra.mxu3 %v3290_v18 }
 0x303   :  { %1849 = vmatpush.bf16.msrb.mxu1 %v3276_v2  ;;  %2088 = vmatpush.bf16.msra.mxu0 %v3306_v24 }
 0x305   :  { %1992 = vmatpush.bf16.msra.mxu3 %v3289_v23  ;;  %v3298_v23 = vld [vmem:[#allocation6 + $0x30] sm:$0xff] }
 0x307   :  { %2148 = vmatpush.bf16.msra.mxu1 %v3299_v12 }
 0x309   :  { %1993 = vmatpush.bf16.msra.mxu3 %v3288_v25  ;;  %v3297_v25 = vld [vmem:[#allocation6 + $0x28] sm:$0xff] }
 0x30b   :  { %2149 = vmatpush.bf16.msra.mxu1 %v3298_v23 }
 0x30d   :  { %1994 = vmatpush.bf16.msra.mxu3 %v3287_v31  ;;  %v3293_v31 = vld [vmem:[#allocation6 + $0x8] sm:$0xff] }
 0x30f   :  { %2150 = vmatpush.bf16.msra.mxu1 %v3297_v25 }
 0x311   :  { %1995 = vmatpush.bf16.msra.mxu3 %v3286_v48 }
 0x315   :  { %1996 = vmatpush.bf16.msra.mxu3 %v3285_v52 }
 0x319   :  { %1997 = vmatpush.bf16.msra.mxu3 %v3284_v55 }
 0x37b   :  { %v1422_v27 = vpop.f32.mrf.mxu0  ;;  %v1509_v28 = vpop.f32.mrf.mxu1 }
 0x37c   :  { %v1513_v30 = vadd.f32 %v1509_v28, %v197_v26  ;;  %v3305_v26 = vld [vmem:[#allocation8 + $0x28] sm:$0xff]  ;;  %v2180_v28 = vpack.c.bf16 %v3610_v63, %v3601_v21  ;;  %v3300_v63 = vld [vmem:[#allocation8] sm:$0xff] }
 0x37d   :  { %2089 = vmatpush.bf16.msra.mxu0 %v3305_v26  ;;  %v3301_v21 = vld [vmem:[#allocation8 + $0x8] sm:$0xff] }
 0x37e   :  { %3350 = vtanh.f32 %v1513_v30  ;;  %v3304_v30 = vld [vmem:[#allocation8 + $0x20] sm:$0xff] }
 0x37f   :  { %v1361_v33 = vpop.f32.mrf.mxu3 }
 0x380   :  { %v1423_v35 = vadd.f32 %v1422_v27, %v1361_v33  ;;  %v3296_v27 = vld [vmem:[#allocation6 + $0x20] sm:$0xff] }
 0x381   :  { %2151 = vmatpush.bf16.msra.mxu1 %v3296_v27  ;;  %2090 = vmatpush.bf16.msra.mxu0 %v3304_v30  ;;  %v3292_v33 = vld [vmem:[#allocation6] sm:$0xff] }
 0x382   :  { %v1430_v36 = vadd.f32 %v3327_v32, %v1423_v35  ;;  %v3303_v32 = vld [vmem:[#allocation8 + $0x18] sm:$0xff]  ;;  %v199_v35 = vadd.f32 %v3552_v60, %v3594_v4  ;;  %v3330_v60 = vld [vmem:[%s3716_s10] ss:$0 sm:$0xff] }
 0x383   :  { %v1424_v37 = vpop.f32.mrf.mxu0  ;;  %v1511_v50 = vpop.f32.mrf.mxu1 }
 0x384   :  { %v3351_v38 = vpop.eup %3350  ;;  %3352 = vtanh.f32 %v1430_v36 }
 0x385   :  { %v1515_v40 = vpack.c.bf16 %v3351_v38, %v3351_v38  ;;  %2152 = vmatpush.bf16.msra.mxu1 %v3295_v29  ;;  %2091 = vmatpush.bf16.msra.mxu0 %v3303_v32  ;;  %v3329_v38 = vld [vmem:[%s3714_s8] ss:$0 sm:$0xff] }
 0x387   :  { %v1363_v41 = vpop.f32.mrf.mxu3  ;;  %1666 = vmatmul.bf16.vlgmr.msrb.gmra.mxu3 %v1515_v40  ;;  %1753 = vmatmul.bf16.vlgmr.msrb.gmra.mxu0 %v1515_v40 }
 0x389   :  { %2153 = vmatpush.bf16.msra.mxu1 %v3294_v20  ;;  %2092 = vmatpush.bf16.msra.mxu0 %v3302_v34 }
 0x38a   :  { %v3619_v44 = vpop.eup %3352 }
 0x38b   :  { %v1532_v46 = vpack.c.bf16 %v3619_v44, %v3619_v44 }
 0x38d   :  { %1605 = vmatmul.bf16.vlgmr.msrb.gmra.mxu2 %v1532_v46  ;;  %2154 = vmatpush.bf16.msra.mxu1 %v3293_v31 }
 0x38e   :  { %2251 = vmatpush.bf16.msrb.mxu2 %v3315_v45  ;;  %2093 = vmatpush.bf16.msra.mxu0 %v3301_v21 }
 0x391   :  { %2155 = vmatpush.bf16.msra.mxu1 %v3292_v33 }
 0x392   :  { %2252 = vmatpush.bf16.msrb.mxu2 %v3314_v49  ;;  %2094 = vmatpush.bf16.msra.mxu0 %v3300_v63 }
 0x396   :  { %2253 = vmatpush.bf16.msrb.mxu2 %v3313_v53 }
 0x39a   :  { %2254 = vmatpush.bf16.msrb.mxu2 %v3312_v57 }
 0x39e   :  { %2255 = vmatpush.bf16.msrb.mxu2 %v3311_v59 }
 0x3a2   :  { %2256 = vmatpush.bf16.msrb.mxu2 %v3310_v62 }
 0x3a6   :  { %2257 = vmatpush.bf16.msrb.mxu2 %v3309_v1 }
 0x3aa   :  { %2258 = vmatpush.bf16.msrb.mxu2 %v3308_v3 }
 0x404   :  { %v1754_v42 = vpop.f32.mrf.mxu0 }
 0x405   :  { %v1758_v6 = vadd.f32 %v1754_v42, %v198_v5  ;;  %v3331_v5 = vld [vmem:[%s3714_s8] ss:$0 sm:$0xff] }
 0x407   :  { %3354 = vtanh.f32 %v1758_v6 }
 0x40a   :  { %v1667_v7 = vpop.f32.mrf.mxu3 }
 0x40c   :  { %v1756_v8 = vpop.f32.mrf.mxu0 }
 0x40d   :  { %v3355_v9 = vpop.eup %3354 }
 0x40e   :  { %v1760_v10 = vpack.c.bf16 %v3355_v9, %v3355_v9 }
 0x410   :  { %v1606_v13 = vpop.f32.mrf.mxu2  ;;  %1911 = vmatmul.bf16.vlgmr.msra.gmra.mxu2 %v1760_v10  ;;  %1998 = vmatmul.bf16.vlgmr.msra.gmra.mxu3 %v1760_v10 }
 0x411   :  { %v1668_v14 = vadd.f32 %v1667_v7, %v1606_v13 }
 0x412   :  { %v1669_v15 = vpop.f32.mrf.mxu3 }
 0x413   :  { %v1675_v16 = vadd.f32 %v3328_v11, %v1668_v14 }
 0x415   :  { %3356 = vtanh.f32 %v1675_v16 }
 0x418   :  { %v1608_v17 = vpop.f32.mrf.mxu2 }
 0x41b   :  { %v3357_v56 = vpop.eup %3356 }
 0x41c   :  { %v1777_v18 = vpack.c.bf16 %v3357_v56, %v3357_v56  ;;  %v2181_v47 = vpack.c.bf16 %v3357_v56, %v3619_v44 }
 0x41e   :  { %1850 = vmatmul.bf16.vlgmr.msrb.gmra.mxu1 %v1777_v18 }
 0x420   :  { %2259 = vmatmul.bf16.vlgmr.msrb.gmra.mxu2 %v2179_v19 }
 0x430   :  { %2264 = vmatmul.bf16.gmra.mxu2 %v2180_v28 }
 0x440   :  { %2269 = vmatmul.bf16.gmra.mxu2 %v2181_v47 }
 0x493   :  { %v1912_v36 = vpop.f32.mrf.mxu2  ;;  %v1999_v37 = vpop.f32.mrf.mxu3 }
 0x494   :  { %v2003_v50 = vadd.f32 %v1999_v37, %v199_v35 }
 0x496   :  { %3358 = vtanh.f32 %v2003_v50 }
 0x49b   :  { %v1851_v39 = vpop.f32.mrf.mxu1  ;;  %v1914_v40 = vpop.f32.mrf.mxu2 }
 0x49c   :  { %v3359_v41 = vpop.eup %3358  ;;  %v1913_v43 = vadd.f32 %v1912_v36, %v1851_v39  ;;  %v2001_v44 = vpop.f32.mrf.mxu3 }
 0x49d   :  { %2169 = vst [vmem:[%s3718_s12] sm:$0xff] %v3359_v41  ;;  %v2005_v45 = vpack.c.bf16 %v3359_v41, %v3359_v41 }
 0x49e   :  { %v1920_v46 = vadd.f32 %v3329_v38, %v1913_v43 }
 0x49f   :  { %2156 = vmatmul.bf16.vlgmr.msra.gmra.mxu1 %v2005_v45 }
 0x4a0   :  { %3360 = vtanh.f32 %v1920_v46 }
 0x4a3   :  { %v1853_v4 = vpop.f32.mrf.mxu1  ;;  %v2260_v48 = vpop.f32.mrf.mxu2 }
 0x4a4   :  { %v2261_v49 = vadd.f32 %v3330_v60, %v2260_v48 }
 0x4a6   :  { %v3361_v51 = vpop.eup %3360  ;;  %2280 = vst.msk [vmem:[%s3717_s11] sm:$0xff] %vm149_vm0, %v2261_v49 }
 0x4a7   :  { %v2022_v52 = vpack.c.bf16 %v3361_v51, %v3361_v51 }
 0x4a9   :  { %2095 = vmatmul.bf16.vlgmr.msra.gmra.mxu0 %v2022_v52 }
 0x4ab   :  { %v2262_v53 = vpop.f32.mrf.mxu2 }
 0x4ac   :  { %v2263_v54 = vadd.f32 %v3330_v60, %v2262_v53 }
 0x4ae   :  { %2281 = vst.msk [vmem:[%s3717_s11 + $0x8] sm:$0xff] %vm149_vm0, %v2263_v54 }
 0x4b3   :  { %v2265_v55 = vpop.f32.mrf.mxu2 }
 0x4b4   :  { %v2266_v57 = vadd.f32 %v3330_v60, %v2265_v55 }
 0x4b6   :  { %2282 = vst.msk [vmem:[%s3717_s11 + $0x10] sm:$0xff] %vm149_vm0, %v2266_v57 }
 0x4bb   :  { %v2267_v58 = vpop.f32.mrf.mxu2 }
 0x4bc   :  { %v2268_v59 = vadd.f32 %v3330_v60, %v2267_v58 }
 0x4be   :  { %2283 = vst.msk [vmem:[%s3717_s11 + $0x18] sm:$0xff] %vm149_vm0, %v2268_v59 }
 0x4c3   :  { %v2270_v61 = vpop.f32.mrf.mxu2 }
 0x4c4   :  { %v2271_v62 = vadd.f32 %v3330_v60, %v2270_v61 }
 0x4c6   :  { %2284 = vst.msk [vmem:[%s3717_s11 + $0x20] sm:$0xff] %vm149_vm0, %v2271_v62 }
 0x4cb   :  { %v2272_v0 = vpop.f32.mrf.mxu2 }
 0x4cc   :  { %v2273_v1 = vadd.f32 %v3330_v60, %v2272_v0 }
 0x4ce   :  { %2285 = vst.msk [vmem:[%s3717_s11 + $0x28] sm:$0xff] %vm149_vm0, %v2273_v1 }
 0x51c   :  { %v2157_v2 = vpop.f32.mrf.mxu1 }
 0x524   :  { %v2159_v3 = vpop.f32.mrf.mxu1 }
 0x526   :  { %v2096_v42 = vpop.f32.mrf.mxu0 }
 0x527   :  { %v2158_v6 = vadd.f32 %v2157_v2, %v2096_v42 }
 0x529   :  { %v2165_v7 = vadd.f32 %v3331_v5, %v2158_v6 }
 0x52b   :  { %3362 = vtanh.f32 %v2165_v7 }
 0x52e   :  { %v2098_v8 = vpop.f32.mrf.mxu0 }
 0x531   :  { %v3363_v9 = vpop.eup %3362 }
 0x532   :  { %2170 = vst [vmem:[%s3719_s13] sm:$0xff] %v3363_v9  ;;  %v2182_v10 = vpack.c.bf16 %v3363_v9, %v3361_v51 }
 0x534   :  { %2274 = vmatmul.bf16.gmra.mxu2 %v2182_v10 }
 0x5b7   :  { %v2275_v11 = vpop.f32.mrf.mxu2 }
 0x5b8   :  { %v2276_v13 = vadd.f32 %v3330_v60, %v2275_v11 }
 0x5ba   :  { %2286 = vst.msk [vmem:[%s3717_s11 + $0x30] sm:$0xff] %vm149_vm0, %v2276_v13 }
 0x5bf   :  { %v2277_v14 = vpop.f32.mrf.mxu2 }
 0x5c0   :  { %v2278_v15 = vadd.f32 %v3330_v60, %v2277_v14 }
 0x5c2   :  { %2287 = vst.msk [vmem:[%s3717_s11 + $0x38] sm:$0xff] %vm149_vm0, %v2278_v15 }
 0x5c3   :  { %2300 = vsyncpa [#allocation5], 1 }
 0x5c4   :  { %2301 = vsyncpa [#allocation7], 1 }

</bundles_post_ra>
